<compile_context>
chip_gen: v7x
topology: tpu7x:2x2x1
jax: 0.10.0
libtpu: 0.0.40
codegen_flags: <defaults>
</compile_context>

<pallas_src>
import functools

import jax
import jax.numpy as jnp
from jax import lax
from jax.experimental import pallas as pl
from jax.experimental.pallas import tpu as pltpu


def _conv3x3_bn_relu_kernel(x_ref, w_ref, b_ref, o_ref, xpad_ref, patch_ref,
                            *, W, lpad):
    """Fused 3x3 conv (pad=1) + folded-BN bias + ReLU for a block of images.

    x_ref:     (Nb, Cin, H*W)         f32 flattened-NCHW input block
    w_ref:     (Cout, 9*Cin)          compute dtype, BN-scale-folded weights
    b_ref:     (Cout, 1)              f32 folded BN bias
    o_ref:     (Nb, Cout, H*W)        f32 output block (natively NCHW)
    xpad_ref:  (Cin, lpad+H*W+W+1)    VMEM scratch: zero halo + image interior
    patch_ref: (9*Cin, H*W)           VMEM scratch: im2col patch
    """
    nb, cin, hw = x_ref.shape
    cdt = patch_ref.dtype

    # Zero the halo scratch once per invocation (covers top/bottom border taps).
    xpad_ref[...] = jnp.zeros_like(xpad_ref)

    # Static column-validity masks for the horizontally shifted taps.
    lane = lax.broadcasted_iota(jnp.int32, (cin, hw), 1)
    col = (lane & (W - 1)) if (W & (W - 1)) == 0 else (lane % W)
    ok_left = col >= 1           # source column c-1 is inside the image
    ok_right = col <= W - 2      # source column c+1 is inside the image

    w = w_ref[...]               # (Cout, 9*Cin)
    bias = b_ref[...]            # (Cout, 1), broadcasts along lanes

    for n in range(nb):          # static unroll; nb is 1 (multi-core) or N (1 TC)
        x = x_ref[n].astype(cdt)                    # (Cin, H*W) -> bf16
        xpad_ref[:, pl.ds(lpad, hw)] = x            # interior; halo stays zero

        # Build the (9*Cin, H*W) im2col patch: one offset window load per tap.
        t = 0
        for dy in (-1, 0, 1):
            for dx in (-1, 0, 1):
                if dy == 0 and dx == 0:
                    tap = x
                else:
                    tap = xpad_ref[:, pl.ds(lpad + dy * W + dx, hw)]
                    if dx == -1:
                        tap = jnp.where(ok_left, tap, jnp.zeros_like(tap))
                    elif dx == 1:
                        tap = jnp.where(ok_right, tap, jnp.zeros_like(tap))
                patch_ref[pl.ds(t * cin, cin), :] = tap
                t += 1

        # Single MXU pass (K = 9*Cin), f32 accumulation, lane-dense output.
        acc = jnp.dot(w, patch_ref[...], preferred_element_type=jnp.float32)
        o_ref[n] = jnp.maximum(acc + bias, 0.0).astype(o_ref.dtype)


def _tensorcores_per_chip() -> int:
    """Best-effort count of TensorCores one JAX device can parallelize over."""
    try:
        kind = jax.devices()[0].device_kind.lower()
    except Exception:  # pragma: no cover
        return 1
    # v7x: 2 TensorCores per chip; v4/v5p megacore splits "parallel" grid axes.
    if "v7" in kind or "7x" in kind or "v5p" in kind or "v4" in kind:
        return 2
    return 1


def conv3x3_bn_relu(x_nchw, w_oihw, gamma, beta, running_mean, running_var,
                    eps=1e-5, compute_dtype=jnp.bfloat16):
    """Conv2d(3x3, pad=1, bias=False) -> BatchNorm2d(eval) -> ReLU, NCHW in/out."""
    N, Cin, H, W = x_nchw.shape
    Cout = w_oihw.shape[0]
    HW = H * W

    # ---- tiny wrapper-side parameter prep (BN folding) ----
    scale = gamma / jnp.sqrt(running_var + eps)                         # (Cout,)
    bias = (beta - running_mean * scale)[:, None].astype(jnp.float32)   # (Cout,1)
    w_scaled = w_oihw * scale[:, None, None, None]                      # fold BN scale
    # (Cout, 9*Cin), tap-major / channel-minor: column (ky*3+kx)*Cin + c.
    w_mat = jnp.transpose(w_scaled, (0, 2, 3, 1)).reshape(Cout, 9 * Cin)
    w_mat = w_mat.astype(compute_dtype)

    # Flattened NCHW activations: pure minor-dim merge (no transpose / pad).
    x_flat = x_nchw.reshape(N, Cin, HW)

    # Batch tiling: one invocation on single-TC chips, one image per parallel
    # grid step when there are 2 TensorCores (v7x).
    nb = N if _tensorcores_per_chip() == 1 else 1
    grid = (N // nb,)

    lpad = ((W + 1 + 127) // 128) * 128     # lane-aligned left halo (>= W+1)
    xpad_w = lpad + HW + W + 1

    kernel = functools.partial(_conv3x3_bn_relu_kernel, W=W, lpad=lpad)
    out_flat = pl.pallas_call(
        kernel,
        out_shape=jax.ShapeDtypeStruct((N, Cout, HW), x_nchw.dtype),
        grid_spec=pltpu.PrefetchScalarGridSpec(
            num_scalar_prefetch=0,
            grid=grid,
            in_specs=[
                pl.BlockSpec((nb, Cin, HW), lambda g: (g, 0, 0)),
                pl.BlockSpec((Cout, 9 * Cin), lambda g: (0, 0)),
                pl.BlockSpec((Cout, 1), lambda g: (0, 0)),
            ],
            out_specs=pl.BlockSpec((nb, Cout, HW), lambda g: (g, 0, 0)),
            scratch_shapes=[
                pltpu.VMEM((Cin, xpad_w), compute_dtype),
                pltpu.VMEM((9 * Cin, HW), compute_dtype),
            ],
        ),
        compiler_params=pltpu.CompilerParams(
            dimension_semantics=("parallel",)),
    )(x_flat, w_mat, bias)

    # TODO(synk): at production DeepLab sizes (Cin up to 2048, ~65x65 maps) add
    # spatial tiling over H with a halo and set vmem_limit_bytes (v7x: 64 MiB).
    return out_flat.reshape(N, Cout, H, W)   # free minor-dim split, stays NCHW


def reference_forward(x_nchw, w_oihw, gamma, beta, running_mean, running_var,
                      eps=1e-5):
    y = lax.conv_general_dilated(
        x_nchw, w_oihw, window_strides=(1, 1), padding="SAME",
        dimension_numbers=("NCHW", "OIHW", "NCHW"),
        precision=lax.Precision.HIGHEST)
    scale = gamma / jnp.sqrt(running_var + eps)
    bias = beta - running_mean * scale
    y = y * scale[None, :, None, None] + bias[None, :, None, None]
    return jnp.maximum(y, 0.0)


if __name__ == "__main__":
    # Small shapes consistent with DeepLabResnet's conv1_concat head:
    # Conv2d(64, concat_channels=64, 3x3, pad=1, bias=False) -> BN -> ReLU.
    N, Cin, Cout, H, W = 2, 64, 64, 16, 16
    key = jax.random.PRNGKey(0)
    kx, kw, kg, kb, km, kv = jax.random.split(key, 6)

    x = jax.random.normal(kx, (N, Cin, H, W), dtype=jnp.float32)
    w = jax.random.normal(kw, (Cout, Cin, 3, 3), dtype=jnp.float32) * 0.1
    gamma = jax.random.uniform(kg, (Cout,), jnp.float32, minval=0.5, maxval=1.5)
    beta = jax.random.normal(kb, (Cout,), dtype=jnp.float32) * 0.1
    running_mean = jax.random.normal(km, (Cout,), dtype=jnp.float32) * 0.05
    running_var = jax.random.uniform(kv, (Cout,), jnp.float32,
                                     minval=0.5, maxval=1.5)

    out = conv3x3_bn_relu(x, w, gamma, beta, running_mean, running_var)
    out = jax.block_until_ready(out)

    ref = jax.block_until_ready(
        reference_forward(x, w, gamma, beta, running_mean, running_var))

    assert out.shape == (N, Cout, H, W)
    max_err = float(jnp.max(jnp.abs(out - ref)))
    # bf16 MXU operands with f32 accumulation -> ~1e-2-level differences vs the
    # f32 reference (as anticipated in the perf review).
    assert jnp.allclose(out, ref, rtol=2e-2, atol=5e-2), max_err
    print("KERNEL_OK")
</pallas_src>

<mosaic_0001>
module attributes {stable_mosaic.version = 11 : i64} {
  func.func @_conv3x3_bn_relu_kernel(%arg0: i32, %arg1: memref<2x64x256xf32, #tpu.memory_space<vmem>>, %arg2: memref<64x576xbf16, #tpu.memory_space<vmem>>, %arg3: memref<64x1xf32, #tpu.memory_space<vmem>>, %arg4: memref<2x64x256xf32, #tpu.memory_space<vmem>>, %arg5: memref<64x401xbf16, #tpu.memory_space<vmem>>, %arg6: memref<576x256xbf16, #tpu.memory_space<vmem>>) attributes {dimension_semantics = [#tpu.dimension_semantics<parallel>], iteration_bounds = array<i64: 1>, scalar_prefetch = 0 : i64, scratch_operands = 2 : i64, tpu.core_type = #tpu.core_type<tc>, window_params = [{transform_indices = @transform_0, window_bounds = array<i64: 2, 64, 256>}, {pipeline_mode = #tpu.pipeline_mode<synchronous>, transform_indices = @transform_1, window_bounds = array<i64: 64, 576>}, {pipeline_mode = #tpu.pipeline_mode<synchronous>, transform_indices = @transform_2, window_bounds = array<i64: 64, 1>}, {transform_indices = @transform_3, window_bounds = array<i64: 2, 64, 256>}]} {
    %cst = arith.constant 0.000000e+00 : bf16
    %0 = vector.broadcast %cst : bf16 to vector<64x401xbf16>
    %c0 = arith.constant 0 : index
    %c0_0 = arith.constant 0 : index
    %1 = vector.load %arg5[%c0, %c0_0] : memref<64x401xbf16, #tpu.memory_space<vmem>>, vector<64x401xbf16>
    tpu.vector_store %arg5[%c0, %c0_0], %0 {strides = array<i32>} : memref<64x401xbf16, #tpu.memory_space<vmem>>, vector<64x401xbf16>,
    %2 = tpu.iota {dimensions = array<i32: 1>} : vector<64x256xi32>
    %c15_i32 = arith.constant 15 : i32
    %3 = vector.broadcast %c15_i32 : i32 to vector<64x256xi32>
    %4 = arith.andi %2, %3 : vector<64x256xi32>
    %c1_i32 = arith.constant 1 : i32
    %5 = vector.broadcast %c1_i32 : i32 to vector<64x256xi32>
    %6 = arith.cmpi sge, %4, %5 : vector<64x256xi32>
    %c14_i32 = arith.constant 14 : i32
    %7 = vector.broadcast %c14_i32 : i32 to vector<64x256xi32>
    %8 = arith.cmpi sle, %4, %7 : vector<64x256xi32>
    %c0_1 = arith.constant 0 : index
    %c0_2 = arith.constant 0 : index
    %9 = vector.load %arg2[%c0_1, %c0_2] : memref<64x576xbf16, #tpu.memory_space<vmem>>, vector<64x576xbf16>
    %c0_3 = arith.constant 0 : index
    %c0_4 = arith.constant 0 : index
    %10 = vector.load %arg3[%c0_3, %c0_4] : memref<64x1xf32, #tpu.memory_space<vmem>>, vector<64x1xf32>
    %c0_5 = arith.constant 0 : index
    %c0_6 = arith.constant 0 : index
    %c0_7 = arith.constant 0 : index
    %11 = vector.load %arg1[%c0_5, %c0_6, %c0_7] : memref<2x64x256xf32, #tpu.memory_space<vmem>>, vector<1x64x256xf32>
    %12 = vector.shape_cast %11 : vector<1x64x256xf32> to vector<64x256xf32>
    %13 = arith.truncf %12 : vector<64x256xf32> to vector<64x256xbf16>
    %c0_8 = arith.constant 0 : index
    %c128 = arith.constant 128 : index
    %14 = vector.load %arg5[%c0_8, %c128] : memref<64x401xbf16, #tpu.memory_space<vmem>>, vector<64x256xbf16>
    tpu.vector_store %arg5[%c0_8, %c128], %13 {strides = array<i32>} : memref<64x401xbf16, #tpu.memory_space<vmem>>, vector<64x256xbf16>,
    %c0_9 = arith.constant 0 : index
    %c111 = arith.constant 111 : index
    %15 = vector.load %arg5[%c0_9, %c111] : memref<64x401xbf16, #tpu.memory_space<vmem>>, vector<64x256xbf16>
    %cst_10 = arith.constant 0.000000e+00 : bf16
    %16 = vector.broadcast %cst_10 : bf16 to vector<64x256xbf16>
    %17 = arith.select %6, %15, %16 : vector<64x256xi1>, vector<64x256xbf16>
    %c0_11 = arith.constant 0 : index
    %c0_12 = arith.constant 0 : index
    %18 = vector.load %arg6[%c0_11, %c0_12] : memref<576x256xbf16, #tpu.memory_space<vmem>>, vector<64x256xbf16>
    tpu.vector_store %arg6[%c0_11, %c0_12], %17 {strides = array<i32>} : memref<576x256xbf16, #tpu.memory_space<vmem>>, vector<64x256xbf16>,
    %c0_13 = arith.constant 0 : index
    %c112 = arith.constant 112 : index
    %19 = vector.load %arg5[%c0_13, %c112] : memref<64x401xbf16, #tpu.memory_space<vmem>>, vector<64x256xbf16>
    %c64 = arith.constant 64 : index
    %c0_14 = arith.constant 0 : index
    %20 = vector.load %arg6[%c64, %c0_14] : memref<576x256xbf16, #tpu.memory_space<vmem>>, vector<64x256xbf16>
    tpu.vector_store %arg6[%c64, %c0_14], %19 {strides = array<i32>} : memref<576x256xbf16, #tpu.memory_space<vmem>>, vector<64x256xbf16>,
    %c0_15 = arith.constant 0 : index
    %c113 = arith.constant 113 : index
    %21 = vector.load %arg5[%c0_15, %c113] : memref<64x401xbf16, #tpu.memory_space<vmem>>, vector<64x256xbf16>
    %cst_16 = arith.constant 0.000000e+00 : bf16
    %22 = vector.broadcast %cst_16 : bf16 to vector<64x256xbf16>
    %23 = arith.select %8, %21, %22 : vector<64x256xi1>, vector<64x256xbf16>
    %c128_17 = arith.constant 128 : index
    %c0_18 = arith.constant 0 : index
    %24 = vector.load %arg6[%c128_17, %c0_18] : memref<576x256xbf16, #tpu.memory_space<vmem>>, vector<64x256xbf16>
    tpu.vector_store %arg6[%c128_17, %c0_18], %23 {strides = array<i32>} : memref<576x256xbf16, #tpu.memory_space<vmem>>, vector<64x256xbf16>,
    %c0_19 = arith.constant 0 : index
    %c127 = arith.constant 127 : index
    %25 = vector.load %arg5[%c0_19, %c127] : memref<64x401xbf16, #tpu.memory_space<vmem>>, vector<64x256xbf16>
    %cst_20 = arith.constant 0.000000e+00 : bf16
    %26 = vector.broadcast %cst_20 : bf16 to vector<64x256xbf16>
    %27 = arith.select %6, %25, %26 : vector<64x256xi1>, vector<64x256xbf16>
    %c192 = arith.constant 192 : index
    %c0_21 = arith.constant 0 : index
    %28 = vector.load %arg6[%c192, %c0_21] : memref<576x256xbf16, #tpu.memory_space<vmem>>, vector<64x256xbf16>
    tpu.vector_store %arg6[%c192, %c0_21], %27 {strides = array<i32>} : memref<576x256xbf16, #tpu.memory_space<vmem>>, vector<64x256xbf16>,
    %c256 = arith.constant 256 : index
    %c0_22 = arith.constant 0 : index
    %29 = vector.load %arg6[%c256, %c0_22] : memref<576x256xbf16, #tpu.memory_space<vmem>>, vector<64x256xbf16>
    tpu.vector_store %arg6[%c256, %c0_22], %13 {strides = array<i32>} : memref<576x256xbf16, #tpu.memory_space<vmem>>, vector<64x256xbf16>,
    %c0_23 = arith.constant 0 : index
    %c129 = arith.constant 129 : index
    %30 = vector.load %arg5[%c0_23, %c129] : memref<64x401xbf16, #tpu.memory_space<vmem>>, vector<64x256xbf16>
    %cst_24 = arith.constant 0.000000e+00 : bf16
    %31 = vector.broadcast %cst_24 : bf16 to vector<64x256xbf16>
    %32 = arith.select %8, %30, %31 : vector<64x256xi1>, vector<64x256xbf16>
    %c320 = arith.constant 320 : index
    %c0_25 = arith.constant 0 : index
    %33 = vector.load %arg6[%c320, %c0_25] : memref<576x256xbf16, #tpu.memory_space<vmem>>, vector<64x256xbf16>
    tpu.vector_store %arg6[%c320, %c0_25], %32 {strides = array<i32>} : memref<576x256xbf16, #tpu.memory_space<vmem>>, vector<64x256xbf16>,
    %c0_26 = arith.constant 0 : index
    %c143 = arith.constant 143 : index
    %34 = vector.load %arg5[%c0_26, %c143] : memref<64x401xbf16, #tpu.memory_space<vmem>>, vector<64x256xbf16>
    %cst_27 = arith.constant 0.000000e+00 : bf16
    %35 = vector.broadcast %cst_27 : bf16 to vector<64x256xbf16>
    %36 = arith.select %6, %34, %35 : vector<64x256xi1>, vector<64x256xbf16>
    %c384 = arith.constant 384 : index
    %c0_28 = arith.constant 0 : index
    %37 = vector.load %arg6[%c384, %c0_28] : memref<576x256xbf16, #tpu.memory_space<vmem>>, vector<64x256xbf16>
    tpu.vector_store %arg6[%c384, %c0_28], %36 {strides = array<i32>} : memref<576x256xbf16, #tpu.memory_space<vmem>>, vector<64x256xbf16>,
    %c0_29 = arith.constant 0 : index
    %c144 = arith.constant 144 : index
    %38 = vector.load %arg5[%c0_29, %c144] : memref<64x401xbf16, #tpu.memory_space<vmem>>, vector<64x256xbf16>
    %c448 = arith.constant 448 : index
    %c0_30 = arith.constant 0 : index
    %39 = vector.load %arg6[%c448, %c0_30] : memref<576x256xbf16, #tpu.memory_space<vmem>>, vector<64x256xbf16>
    tpu.vector_store %arg6[%c448, %c0_30], %38 {strides = array<i32>} : memref<576x256xbf16, #tpu.memory_space<vmem>>, vector<64x256xbf16>,
    %c0_31 = arith.constant 0 : index
    %c145 = arith.constant 145 : index
    %40 = vector.load %arg5[%c0_31, %c145] : memref<64x401xbf16, #tpu.memory_space<vmem>>, vector<64x256xbf16>
    %cst_32 = arith.constant 0.000000e+00 : bf16
    %41 = vector.broadcast %cst_32 : bf16 to vector<64x256xbf16>
    %42 = arith.select %8, %40, %41 : vector<64x256xi1>, vector<64x256xbf16>
    %c512 = arith.constant 512 : index
    %c0_33 = arith.constant 0 : index
    %43 = vector.load %arg6[%c512, %c0_33] : memref<576x256xbf16, #tpu.memory_space<vmem>>, vector<64x256xbf16>
    tpu.vector_store %arg6[%c512, %c0_33], %42 {strides = array<i32>} : memref<576x256xbf16, #tpu.memory_space<vmem>>, vector<64x256xbf16>,
    %c0_34 = arith.constant 0 : index
    %c0_35 = arith.constant 0 : index
    %44 = vector.load %arg6[%c0_34, %c0_35] : memref<576x256xbf16, #tpu.memory_space<vmem>>, vector<576x256xbf16>
    %cst_36 = arith.constant dense<0.000000e+00> : vector<64x256xf32>
    %45 = tpu.matmul %9, %44, %cst_36 {dimension_numbers = #tpu.dot_dimension_numbers<[1], [0], [0], [1], [0, 0, 1, 1], [], []>} : vector<64x576xbf16>, vector<576x256xbf16>, vector<64x256xf32> -> vector<64x256xf32>
    %46 = vector.broadcast %10 : vector<64x1xf32> to vector<64x256xf32>
    %47 = arith.addf %45, %46 : vector<64x256xf32>
    %cst_37 = arith.constant 0.000000e+00 : f32
    %48 = vector.broadcast %cst_37 : f32 to vector<64x256xf32>
    %49 = arith.maximumf %47, %48 : vector<64x256xf32>
    %c0_38 = arith.constant 0 : index
    %c0_39 = arith.constant 0 : index
    %c0_40 = arith.constant 0 : index
    %50 = vector.load %arg4[%c0_38, %c0_39, %c0_40] : memref<2x64x256xf32, #tpu.memory_space<vmem>>, vector<1x64x256xf32>
    %51 = vector.shape_cast %50 : vector<1x64x256xf32> to vector<64x256xf32>
    %52 = vector.shape_cast %49 : vector<64x256xf32> to vector<1x64x256xf32>
    tpu.vector_store %arg4[%c0_38, %c0_39, %c0_40], %52 {strides = array<i32>} : memref<2x64x256xf32, #tpu.memory_space<vmem>>, vector<1x64x256xf32>,
    %c1 = arith.constant 1 : index
    %c0_41 = arith.constant 0 : index
    %c0_42 = arith.constant 0 : index
    %53 = vector.load %arg1[%c1, %c0_41, %c0_42] : memref<2x64x256xf32, #tpu.memory_space<vmem>>, vector<1x64x256xf32>
    %54 = vector.shape_cast %53 : vector<1x64x256xf32> to vector<64x256xf32>
    %55 = arith.truncf %54 : vector<64x256xf32> to vector<64x256xbf16>
    %c0_43 = arith.constant 0 : index
    %c128_44 = arith.constant 128 : index
    %56 = vector.load %arg5[%c0_43, %c128_44] : memref<64x401xbf16, #tpu.memory_space<vmem>>, vector<64x256xbf16>
    tpu.vector_store %arg5[%c0_43, %c128_44], %55 {strides = array<i32>} : memref<64x401xbf16, #tpu.memory_space<vmem>>, vector<64x256xbf16>,
    %c0_45 = arith.constant 0 : index
    %c111_46 = arith.constant 111 : index
    %57 = vector.load %arg5[%c0_45, %c111_46] : memref<64x401xbf16, #tpu.memory_space<vmem>>, vector<64x256xbf16>
    %cst_47 = arith.constant 0.000000e+00 : bf16
    %58 = vector.broadcast %cst_47 : bf16 to vector<64x256xbf16>
    %59 = arith.select %6, %57, %58 : vector<64x256xi1>, vector<64x256xbf16>
    %c0_48 = arith.constant 0 : index
    %c0_49 = arith.constant 0 : index
    %60 = vector.load %arg6[%c0_48, %c0_49] : memref<576x256xbf16, #tpu.memory_space<vmem>>, vector<64x256xbf16>
    tpu.vector_store %arg6[%c0_48, %c0_49], %59 {strides = array<i32>} : memref<576x256xbf16, #tpu.memory_space<vmem>>, vector<64x256xbf16>,
    %c0_50 = arith.constant 0 : index
    %c112_51 = arith.constant 112 : index
    %61 = vector.load %arg5[%c0_50, %c112_51] : memref<64x401xbf16, #tpu.memory_space<vmem>>, vector<64x256xbf16>
    %c64_52 = arith.constant 64 : index
    %c0_53 = arith.constant 0 : index
    %62 = vector.load %arg6[%c64_52, %c0_53] : memref<576x256xbf16, #tpu.memory_space<vmem>>, vector<64x256xbf16>
    tpu.vector_store %arg6[%c64_52, %c0_53], %61 {strides = array<i32>} : memref<576x256xbf16, #tpu.memory_space<vmem>>, vector<64x256xbf16>,
    %c0_54 = arith.constant 0 : index
    %c113_55 = arith.constant 113 : index
    %63 = vector.load %arg5[%c0_54, %c113_55] : memref<64x401xbf16, #tpu.memory_space<vmem>>, vector<64x256xbf16>
    %cst_56 = arith.constant 0.000000e+00 : bf16
    %64 = vector.broadcast %cst_56 : bf16 to vector<64x256xbf16>
    %65 = arith.select %8, %63, %64 : vector<64x256xi1>, vector<64x256xbf16>
    %c128_57 = arith.constant 128 : index
    %c0_58 = arith.constant 0 : index
    %66 = vector.load %arg6[%c128_57, %c0_58] : memref<576x256xbf16, #tpu.memory_space<vmem>>, vector<64x256xbf16>
    tpu.vector_store %arg6[%c128_57, %c0_58], %65 {strides = array<i32>} : memref<576x256xbf16, #tpu.memory_space<vmem>>, vector<64x256xbf16>,
    %c0_59 = arith.constant 0 : index
    %c127_60 = arith.constant 127 : index
    %67 = vector.load %arg5[%c0_59, %c127_60] : memref<64x401xbf16, #tpu.memory_space<vmem>>, vector<64x256xbf16>
    %cst_61 = arith.constant 0.000000e+00 : bf16
    %68 = vector.broadcast %cst_61 : bf16 to vector<64x256xbf16>
    %69 = arith.select %6, %67, %68 : vector<64x256xi1>, vector<64x256xbf16>
    %c192_62 = arith.constant 192 : index
    %c0_63 = arith.constant 0 : index
    %70 = vector.load %arg6[%c192_62, %c0_63] : memref<576x256xbf16, #tpu.memory_space<vmem>>, vector<64x256xbf16>
    tpu.vector_store %arg6[%c192_62, %c0_63], %69 {strides = array<i32>} : memref<576x256xbf16, #tpu.memory_space<vmem>>, vector<64x256xbf16>,
    %c256_64 = arith.constant 256 : index
    %c0_65 = arith.constant 0 : index
    %71 = vector.load %arg6[%c256_64, %c0_65] : memref<576x256xbf16, #tpu.memory_space<vmem>>, vector<64x256xbf16>
    tpu.vector_store %arg6[%c256_64, %c0_65], %55 {strides = array<i32>} : memref<576x256xbf16, #tpu.memory_space<vmem>>, vector<64x256xbf16>,
    %c0_66 = arith.constant 0 : index
    %c129_67 = arith.constant 129 : index
    %72 = vector.load %arg5[%c0_66, %c129_67] : memref<64x401xbf16, #tpu.memory_space<vmem>>, vector<64x256xbf16>
    %cst_68 = arith.constant 0.000000e+00 : bf16
    %73 = vector.broadcast %cst_68 : bf16 to vector<64x256xbf16>
    %74 = arith.select %8, %72, %73 : vector<64x256xi1>, vector<64x256xbf16>
    %c320_69 = arith.constant 320 : index
    %c0_70 = arith.constant 0 : index
    %75 = vector.load %arg6[%c320_69, %c0_70] : memref<576x256xbf16, #tpu.memory_space<vmem>>, vector<64x256xbf16>
    tpu.vector_store %arg6[%c320_69, %c0_70], %74 {strides = array<i32>} : memref<576x256xbf16, #tpu.memory_space<vmem>>, vector<64x256xbf16>,
    %c0_71 = arith.constant 0 : index
    %c143_72 = arith.constant 143 : index
    %76 = vector.load %arg5[%c0_71, %c143_72] : memref<64x401xbf16, #tpu.memory_space<vmem>>, vector<64x256xbf16>
    %cst_73 = arith.constant 0.000000e+00 : bf16
    %77 = vector.broadcast %cst_73 : bf16 to vector<64x256xbf16>
    %78 = arith.select %6, %76, %77 : vector<64x256xi1>, vector<64x256xbf16>
    %c384_74 = arith.constant 384 : index
    %c0_75 = arith.constant 0 : index
    %79 = vector.load %arg6[%c384_74, %c0_75] : memref<576x256xbf16, #tpu.memory_space<vmem>>, vector<64x256xbf16>
    tpu.vector_store %arg6[%c384_74, %c0_75], %78 {strides = array<i32>} : memref<576x256xbf16, #tpu.memory_space<vmem>>, vector<64x256xbf16>,
    %c0_76 = arith.constant 0 : index
    %c144_77 = arith.constant 144 : index
    %80 = vector.load %arg5[%c0_76, %c144_77] : memref<64x401xbf16, #tpu.memory_space<vmem>>, vector<64x256xbf16>
    %c448_78 = arith.constant 448 : index
    %c0_79 = arith.constant 0 : index
    %81 = vector.load %arg6[%c448_78, %c0_79] : memref<576x256xbf16, #tpu.memory_space<vmem>>, vector<64x256xbf16>
    tpu.vector_store %arg6[%c448_78, %c0_79], %80 {strides = array<i32>} : memref<576x256xbf16, #tpu.memory_space<vmem>>, vector<64x256xbf16>,
    %c0_80 = arith.constant 0 : index
    %c145_81 = arith.constant 145 : index
    %82 = vector.load %arg5[%c0_80, %c145_81] : memref<64x401xbf16, #tpu.memory_space<vmem>>, vector<64x256xbf16>
    %cst_82 = arith.constant 0.000000e+00 : bf16
    %83 = vector.broadcast %cst_82 : bf16 to vector<64x256xbf16>
    %84 = arith.select %8, %82, %83 : vector<64x256xi1>, vector<64x256xbf16>
    %c512_83 = arith.constant 512 : index
    %c0_84 = arith.constant 0 : index
    %85 = vector.load %arg6[%c512_83, %c0_84] : memref<576x256xbf16, #tpu.memory_space<vmem>>, vector<64x256xbf16>
    tpu.vector_store %arg6[%c512_83, %c0_84], %84 {strides = array<i32>} : memref<576x256xbf16, #tpu.memory_space<vmem>>, vector<64x256xbf16>,
    %c0_85 = arith.constant 0 : index
    %c0_86 = arith.constant 0 : index
    %86 = vector.load %arg6[%c0_85, %c0_86] : memref<576x256xbf16, #tpu.memory_space<vmem>>, vector<576x256xbf16>
    %cst_87 = arith.constant dense<0.000000e+00> : vector<64x256xf32>
    %87 = tpu.matmul %9, %86, %cst_87 {dimension_numbers = #tpu.dot_dimension_numbers<[1], [0], [0], [1], [0, 0, 1, 1], [], []>} : vector<64x576xbf16>, vector<576x256xbf16>, vector<64x256xf32> -> vector<64x256xf32>
    %88 = vector.broadcast %10 : vector<64x1xf32> to vector<64x256xf32>
    %89 = arith.addf %87, %88 : vector<64x256xf32>
    %cst_88 = arith.constant 0.000000e+00 : f32
    %90 = vector.broadcast %cst_88 : f32 to vector<64x256xf32>
    %91 = arith.maximumf %89, %90 : vector<64x256xf32>
    %c1_89 = arith.constant 1 : index
    %c0_90 = arith.constant 0 : index
    %c0_91 = arith.constant 0 : index
    %92 = vector.load %arg4[%c1_89, %c0_90, %c0_91] : memref<2x64x256xf32, #tpu.memory_space<vmem>>, vector<1x64x256xf32>
    %93 = vector.shape_cast %92 : vector<1x64x256xf32> to vector<64x256xf32>
    %94 = vector.shape_cast %91 : vector<64x256xf32> to vector<1x64x256xf32>
    tpu.vector_store %arg4[%c1_89, %c0_90, %c0_91], %94 {strides = array<i32>} : memref<2x64x256xf32, #tpu.memory_space<vmem>>, vector<1x64x256xf32>,
    return
  }
  func.func @transform_0(%arg0: i32) -> (i32, i32, i32) {
    %c0_i32 = arith.constant 0 : i32
    %c0_i32_0 = arith.constant 0 : i32
    %c0_i32_1 = arith.constant 0 : i32
    return %arg0, %c0_i32, %c0_i32_0 : i32, i32, i32
  }
  func.func @transform_1(%arg0: i32) -> (i32, i32) {
    %c0_i32 = arith.constant 0 : i32
    %c0_i32_0 = arith.constant 0 : i32
    %c0_i32_1 = arith.constant 0 : i32
    return %c0_i32, %c0_i32_0 : i32, i32
  }
  func.func @transform_2(%arg0: i32) -> (i32, i32) {
    %c0_i32 = arith.constant 0 : i32
    %c0_i32_0 = arith.constant 0 : i32
    %c0_i32_1 = arith.constant 0 : i32
    return %c0_i32, %c0_i32_0 : i32, i32
  }
  func.func @transform_3(%arg0: i32) -> (i32, i32, i32) {
    %c0_i32 = arith.constant 0 : i32
    %c0_i32_0 = arith.constant 0 : i32
    %c0_i32_1 = arith.constant 0 : i32
    return %arg0, %c0_i32, %c0_i32_0 : i32, i32, i32
  }
}

</mosaic_0001>

<bundles_post_ra>
// kernel: tpu_custom_call.1
= control target key start
LH: loop header
LB: loop body
LE: loop exit
PB: predicated region body
PF: predicated region fallthrough
CT: control target
= control target key end

     0   :  { %8 = vsyncpa [#allocation5], 0  ;;  %s3685_s0 = inlined_call_operand.hbm [shape: f32[2,64,256], index: 0, kind: input, shape index: {}]   ;;  %s3686_s1 = inlined_call_operand.hbm [shape: bf16[64,576], index: 1, kind: input, shape index: {}]   ;;  %s3687_s2 = inlined_call_operand.vmem [shape: f32[64,1], index: 2, kind: input, shape index: {}]   ;;  %s3688_s3 = inlined_call_operand.hbm [shape: f32[2,64,256], index: 3, kind: output, shape index: {}]  }
   0x1   :  { %9 = vsyncpa [#allocation8], 0 }
   0x2   :  { %10 = vsyncpa [#allocation6], 0  ;;  %s2625_s12 = smov [#allocation4]   ;;  %s2553_s16 = scalar_lea.hbm %s3685_s0, 4096 }
   0x3   :  { %s16_s13 = sshll.u32 %s2625_s12, 4  ;;  %p2554_p0 = scmp.ne.s32.totalorder %s3685_s0, %s2553_s16  ;;  %s17_s13 = int_to_ptr.vmem [resolvable:$true] %s16_s13 }
   0x4   :  { %p2557_p1 = scmp.lt.u32.totalorder %s2553_s16, %s3685_s0 }
   0x6   :  { %p2559_p2 = pnand %p2557_p1, %p2554_p0 }
   0x8   :  { %2562 = shalt.err (!%p2559_p2)
}
   0x9   :  { %s2563_s21 = scalar_lea.vmem %s17_s13, 4096  ;;  %p2568_p4 = scmp.lt.s32.totalorder %s17_s13, %s17_s13 }
   0xa   :  { %p2564_p3 = scmp.ne.s32.totalorder %s17_s13, %s2563_s21  ;;  %p2569_p5 = scmp.lt.s32.totalorder %s2563_s21, %s2563_s21 }
   0xc   :  { %p2570_p6 = por %p2569_p5, %p2568_p4 }
   0xe   :  { %p2571_p7 = pnand %p2570_p6, %p2564_p3 }
  0x10   :  { %2574 = shalt.err (!%p2571_p7)
}
  0x11   :  { %s2626_s22 = smov 256   ;;  %s2627_s23 = smov 16  }
  0x12   :  { %22 = dma.hbm_to_vmem [thread:$0]  %s3685_s0, 4096, %s17_s13, [#allocation5], %s2626_s22, %s2626_s22, %s2627_s23  }
  0x13   :  { %s2628_s26 = smov [#allocation7]   ;;  %s2575_s30 = scalar_lea.hbm %s3686_s1, 2560 }
  0x14   :  { %s28_s27 = sshll.u32 %s2628_s26, 4  ;;  %p2576_p8 = scmp.ne.s32.totalorder %s3686_s1, %s2575_s30  ;;  %s29_s27 = int_to_ptr.vmem [resolvable:$true] %s28_s27 }
  0x15   :  { %p2579_p9 = scmp.lt.u32.totalorder %s2575_s30, %s3686_s1 }
  0x17   :  { %p2581_p10 = pnand %p2579_p9, %p2576_p8 }
  0x19   :  { %2584 = shalt.err (!%p2581_p10)
}
  0x1a   :  { %s2585_s8 = scalar_lea.vmem %s29_s27, 2560  ;;  %p2590_p12 = scmp.lt.s32.totalorder %s29_s27, %s29_s27 }
  0x1b   :  { %p2586_p11 = scmp.ne.s32.totalorder %s29_s27, %s2585_s8  ;;  %p2591_p13 = scmp.lt.s32.totalorder %s2585_s8, %s2585_s8 }
  0x1d   :  { %p2592_p0 = por %p2591_p13, %p2590_p12 }
  0x1f   :  { %p2593_p1 = pnand %p2592_p0, %p2586_p11 }
  0x21   :  { %2596 = shalt.err (!%p2593_p1)
}
  0x22   :  { %s2629_s0 = smov 320   ;;  %s2630_s9 = smov 20  }
  0x23   :  { %34 = dma.hbm_to_vmem [thread:$0]  %s3686_s1, 2560, %s29_s27, [#allocation8], %s2629_s0, %s2629_s0, %s2630_s9  }
  0x24   :  { %2619 = dma.done.wait [#allocation5], 4096  }
  0x25   :  { %2620 = vsyncadd [#allocation5], 4294963200 }
  0x26   :  { %2621 = dma.done.wait [#allocation8], 2560  }
  0x27   :  { %2622 = vsyncadd [#allocation8], 4294964736  ;;  %v63_v0 = vlaneseq  ;;  %v3692_v1 = vmov 0   ;;  %v1345_v8 = vld [vmem:[#allocation4 + $0x80] sm:$0xff]  ;;  %v1347_v9 = vld [vmem:[#allocation4 + $0x90] sm:$0xff]  ;;  %s2632_s1 = smov 111  }
  0x28   :  { %46 = vst [vmem:[#allocation2] sm:$0xff] %v3692_v1  ;;  %264 = vrot.lane.b32.xlu0 %v3692_v1, %s2627_s23  ;;  %1485 = vrot.lane.b32.xlu1 %v3692_v1, %s2627_s23  ;;  %v2694_v11 = vpack.c.bf16 %v1347_v9, %v1345_v8  ;;  %v1346_v12 = vld [vmem:[#allocation4 + $0x88] sm:$0xff]  ;;  %v1348_v13 = vld [vmem:[#allocation4 + $0x98] sm:$0xff]  ;;  %v1349_v18 = vld [vmem:[#allocation4 + $0xa0] sm:$0xff]  ;;  %s2633_s12 = smov 113   ;;  %s2634_s13 = smov 127  }
  0x29   :  { %v64_v2 = vand.u32 127, %v63_v0  ;;  %2514 = vset.pattern.permute.xlu0 %v3692_v1  ;;  %2515 = vset.pattern.permute.xlu1 %v3692_v1  ;;  %v151_v3 = vshrl.u32 %v63_v0, 7  ;;  %v2697_v15 = vpack.c.bf16 %v1348_v13, %v1346_v12  ;;  %v1351_v19 = vld [vmem:[#allocation4 + $0xb0] sm:$0xff]  ;;  %v1350_v22 = vld [vmem:[#allocation4 + $0xa8] sm:$0xff]  ;;  %v1352_v23 = vld [vmem:[#allocation4 + $0xb8] sm:$0xff]  ;;  %s2635_s14 = smov 1  }
  0x2a   :  { %1369 = vst [vmem:[#allocation2 + $0x8] sm:$0xff] %v2694_v11  ;;  %v2706_v21 = vpack.c.bf16 %v1351_v19, %v1349_v18  ;;  %v2712_v25 = vpack.c.bf16 %v1352_v23, %v1350_v22  ;;  %v1353_v26 = vld [vmem:[#allocation4 + $0xc0] sm:$0xff]  ;;  %v1355_v28 = vld [vmem:[#allocation4 + $0xd0] sm:$0xff]  ;;  %v1354_v30 = vld [vmem:[#allocation4 + $0xc8] sm:$0xff]  ;;  %vm49_vm6 = vcmask 138240   ;;  %s2636_s15 = smov 15  }
  0x2b   :  { %v65_v4 = vadd.s32 128, %v64_v2  ;;  %v66_v5 = vand.u32 15, %v64_v2  ;;  %v152_v7 = vsub.s32 0, %v151_v3  ;;  %v156_v10 = vsub.s32 4, %v151_v3  ;;  %1370 = vst [vmem:[#allocation2 + $0x10] sm:$0xff] %v2697_v15  ;;  %v1356_v31 = vld [vmem:[#allocation4 + $0xd8] sm:$0xff] }
  0x2c   :  { %1371 = vst [vmem:[#allocation2 + $0x28] sm:$0xff] %v2706_v21  ;;  %1372 = vst [vmem:[#allocation2 + $0x30] sm:$0xff] %v2712_v25  ;;  %v2720_v29 = vpack.c.bf16 %v1355_v28, %v1353_v26  ;;  %v104_v32 = vld [vmem:[#allocation4] sm:$0xff]  ;;  %v106_v33 = vld [vmem:[#allocation4 + $0x10] sm:$0xff]  ;;  %v2722_v34 = vpack.c.bf16 %v1356_v31, %v1354_v30  ;;  %s2637_s16 = smov 17   ;;  %vm162_vm8 = vcmask 908288  }
  0x2d   :  { %v67_v6 = vand.u32 15, %v65_v4  ;;  %vm68_vm0 = vcmp.ge.s32.totalorder %v66_v5, 1  ;;  %vm70_vm1 = vcmp.le.s32.totalorder %v66_v5, 14  ;;  %v1357_v35 = vld [vmem:[#allocation4 + $0xe0] sm:$0xff]  ;;  %v1359_v36 = vld [vmem:[#allocation4 + $0xf0] sm:$0xff]  ;;  %v105_v37 = vld [vmem:[#allocation4 + $0x8] sm:$0xff]  ;;  %v2737_v43 = vpack.c.bf16 %v106_v33, %v104_v32 }
  0x2e   :  { %v107_v38 = vld [vmem:[#allocation4 + $0x18] sm:$0xff]  ;;  %1373 = vst [vmem:[#allocation2 + $0x48] sm:$0xff] %v2720_v29  ;;  %v2727_v39 = vpack.c.bf16 %v1359_v36, %v1357_v35  ;;  %v1358_v40 = vld [vmem:[#allocation4 + $0xe8] sm:$0xff]  ;;  %1374 = vst [vmem:[#allocation2 + $0x50] sm:$0xff] %v2722_v34  ;;  %vm339_vm10 = vcmask 924672   ;;  %vm433_vm13 = vcmask 1039360  }
  0x2f   :  { %vm69_vm2 = vcmp.ge.s32.totalorder %v67_v6, 1  ;;  %vm71_vm3 = vcmp.le.s32.totalorder %v67_v6, 14  ;;  %v1360_v41 = vld [vmem:[#allocation4 + $0xf8] sm:$0xff]  ;;  %v2742_v44 = vpack.c.bf16 %v107_v38, %v105_v37  ;;  %v108_v45 = vld [vmem:[#allocation4 + $0x20] sm:$0xff]  ;;  %v110_v46 = vld [vmem:[#allocation4 + $0x30] sm:$0xff]  ;;  %50 = vst.msk [vmem:[#allocation2 + $0x18] sm:$0xff] %vm49_vm6, %v3692_v1 }
  0x30   :  { %vm148_vm4 = vmpackc.low %vm69_vm2, %vm68_vm0  ;;  %1375 = vst [vmem:[#allocation2 + $0x68] sm:$0xff] %v2727_v39  ;;  %v2733_v42 = vpack.c.bf16 %v1360_v41, %v1358_v40  ;;  %v109_v47 = vld [vmem:[#allocation4 + $0x28] sm:$0xff]  ;;  %v111_v48 = vld [vmem:[#allocation4 + $0x38] sm:$0xff]  ;;  %v2754_v49 = vpack.c.bf16 %v110_v46, %v108_v45  ;;  %vm486_vm0 = vcmask 7168   ;;  %s2638_s17 = smov 112  }
  0x31   :  { %v149_v14 = vsel %vm148_vm4, 65537, %v3692_v1  ;;  %vm325_vm5 = vmpackc.low %vm71_vm3, %vm70_vm1  ;;  %v2758_v50 = vpack.c.bf16 %v111_v48, %v109_v47  ;;  %v112_v51 = vld [vmem:[#allocation4 + $0x40] sm:$0xff]  ;;  %v114_v52 = vld [vmem:[#allocation4 + $0x50] sm:$0xff]  ;;  %54 = vst.msk [vmem:[#allocation2 + $0x38] sm:$0xff] %vm49_vm6, %v3692_v1  ;;  %vm288_vm4 = vcmask 130048  }
  0x32   :  { %v2699_v16 = vrot.slane %v149_v14, %v152_v7  ;;  %v326_v17 = vsel %vm325_vm5, 65537, %v3692_v1  ;;  %v2710_v24 = vrot.slane %v149_v14, %v156_v10  ;;  %1376 = vst [vmem:[#allocation2 + $0x70] sm:$0xff] %v2733_v42  ;;  %v113_v53 = vld [vmem:[#allocation4 + $0x48] sm:$0xff]  ;;  %v115_v54 = vld [vmem:[#allocation4 + $0x58] sm:$0xff]  ;;  %v2770_v55 = vpack.c.bf16 %v114_v52, %v112_v51  ;;  %v116_v57 = vld [vmem:[#allocation4 + $0x60] sm:$0xff] }
  0x33   :  { %v2703_v20 = vrot.slane %v326_v17, %v152_v7  ;;  %v2716_v27 = vrot.slane %v326_v17, %v156_v10  ;;  %v2774_v56 = vpack.c.bf16 %v115_v54, %v113_v53  ;;  %v118_v58 = vld [vmem:[#allocation4 + $0x70] sm:$0xff]  ;;  %v117_v59 = vld [vmem:[#allocation4 + $0x68] sm:$0xff]  ;;  %v119_v60 = vld [vmem:[#allocation4 + $0x78] sm:$0xff]  ;;  %58 = vst.msk [vmem:[#allocation2 + $0x58] sm:$0xff] %vm49_vm6, %v3692_v1  ;;  %vm392_vm5 = vcmask 121856  }
  0x34   :  { %158 = vrot.lane.b32.xlu0 %v2699_v16, %s2632_s1  ;;  %v2786_v61 = vpack.c.bf16 %v118_v58, %v116_v57  ;;  %v2790_v62 = vpack.c.bf16 %v119_v60, %v117_v59  ;;  %62 = vst.msk [vmem:[#allocation2 + $0x78] sm:$0xff] %vm49_vm6, %v3692_v1 }
  0x35   :  { %335 = vrot.lane.b32.xlu1 %v2703_v20, %s2633_s12 }
  0x36   :  { %3694 = vst [vmem:[#allocation13_spill] sm:$0xff] %v2786_v61 }
  0x38   :  { %160 = vrot.lane.b32.xlu0 %v2710_v24, %s2632_s1 }
  0x39   :  { %337 = vrot.lane.b32.xlu1 %v2716_v27, %s2633_s12 }
  0x3c   :  { %429 = vrot.lane.b32.xlu0 %v2699_v16, %s2634_s13 }
  0x3d   :  { %431 = vrot.lane.b32.xlu1 %v2710_v24, %s2634_s13 }
  0x40   :  { %266 = vrot.lane.b32.xlu0 %v2737_v43, %s2627_s23 }
  0x41   :  { %268 = vrot.lane.b32.xlu1 %v2742_v44, %s2627_s23 }
  0x44   :  { %531 = vrot.lane.b32.xlu0 %v2703_v20, %s2635_s14 }
  0x45   :  { %533 = vrot.lane.b32.xlu1 %v2716_v27, %s2635_s14 }
  0x48   :  { %1487 = vrot.lane.b32.xlu0 %v2694_v11, %s2627_s23 }
  0x49   :  { %1489 = vrot.lane.b32.xlu1 %v2697_v15, %s2627_s23 }
  0x4c   :  { %272 = vrot.lane.b32.xlu0 %v2754_v49, %s2627_s23 }
  0x4d   :  { %274 = vrot.lane.b32.xlu1 %v2758_v50, %s2627_s23 }
  0x50   :  { %1493 = vrot.lane.b32.xlu0 %v2706_v21, %s2627_s23 }
  0x51   :  { %1495 = vrot.lane.b32.xlu1 %v2712_v25, %s2627_s23 }
  0x54   :  { %270 = vrot.lane.b32.xlu0 %v3692_v1, %s2627_s23 }
  0x55   :  { %1491 = vrot.lane.b32.xlu1 %v3692_v1, %s2627_s23 }
  0x58   :  { %278 = vrot.lane.b32.xlu0 %v2770_v55, %s2627_s23 }
  0x59   :  { %280 = vrot.lane.b32.xlu1 %v2774_v56, %s2627_s23 }
  0x5c   :  { %1499 = vrot.lane.b32.xlu0 %v2720_v29, %s2627_s23 }
  0x5d   :  { %1501 = vrot.lane.b32.xlu1 %v2722_v34, %s2627_s23 }
  0x60   :  { %276 = vrot.lane.b32.xlu0 %v3692_v1, %s2627_s23 }
  0x61   :  { %1497 = vrot.lane.b32.xlu1 %v3692_v1, %s2627_s23 }
  0x64   :  { %284 = vrot.lane.b32.xlu0 %v2786_v61, %s2627_s23 }
  0x65   :  { %286 = vrot.lane.b32.xlu1 %v2790_v62, %s2627_s23 }
  0x68   :  { %1505 = vrot.lane.b32.xlu0 %v2727_v39, %s2627_s23 }
  0x69   :  { %1507 = vrot.lane.b32.xlu1 %v2733_v42, %s2627_s23 }
  0x6c   :  { %282 = vrot.lane.b32.xlu0 %v3692_v1, %s2627_s23 }
  0x6d   :  { %1503 = vrot.lane.b32.xlu1 %v3692_v1, %s2627_s23 }
  0x70   :  { %623 = vrot.lane.b32.xlu0 %v2699_v16, %s2636_s15 }
  0x71   :  { %625 = vrot.lane.b32.xlu1 %v2710_v24, %s2636_s15 }
  0x74   :  { %191 = vrot.lane.b32.xlu0 %v3692_v1, %s2637_s16 }
  0x78   :  { %197 = vrot.lane.b32.xlu0 %v3692_v1, %s2637_s16 }
  0x7c   :  { %203 = vrot.lane.b32.xlu0 %v3692_v1, %s2637_s16 }
  0x80   :  { %209 = vrot.lane.b32.xlu0 %v3692_v1, %s2637_s16 }
  0x84   :  { %368 = vrot.lane.b32.xlu0 %v3692_v1, %s2636_s15 }
  0x9a   :  { %v2816_v63 = vpop.permute.xlu0 %264  ;;  %v2820_v3 = vpop.permute.xlu1 %1485 }
  0xa6   :  { %v159_v0 = vpop.permute.xlu0 %158 }
  0xa7   :  { %v336_v6 = vpop.permute.xlu1 %335 }
  0xaa   :  { %v161_v2 = vpop.permute.xlu0 %160 }
  0xab   :  { %vm166_vm7 = vcmp.ne.s16.totalorder %v161_v2, 0  ;;  %v163_v7 = vsel %vm162_vm8, %v159_v0, %v161_v2  ;;  %v2863_v18 = vpop.permute.xlu1 %337 }
  0xac   :  { %v169_v4 = vsel %vm166_vm7, %v2742_v44, 0  ;;  %v1391_v5 = vsel %vm166_vm7, %v2697_v15, 0  ;;  %v172_v8 = vsel %vm166_vm7, %v2758_v50, 0  ;;  %vm165_vm9 = vcmp.ne.s16.totalorder %v163_v7, 0 }
  0xad   :  { %195 = vrot.lane.b32.xlu1 %v169_v4, %s2637_s16  ;;  %v1394_v9 = vsel %vm166_vm7, %v2712_v25, 0  ;;  %v168_v10 = vsel %vm165_vm9, %v2737_v43, 0  ;;  %v1390_v12 = vsel %vm165_vm9, %v2694_v11, 0  ;;  %v175_v13 = vsel %vm166_vm7, %v2774_v56, 0 }
  0xae   :  { %193 = vrot.lane.b32.xlu0 %v168_v10, %s2637_s16  ;;  %v171_v14 = vsel %vm165_vm9, %v2754_v49, 0  ;;  %v1397_v16 = vsel %vm166_vm7, %v2722_v34, 0  ;;  %v1393_v17 = vsel %vm165_vm9, %v2706_v21, 0  ;;  %v2867_v19 = vpop.permute.xlu0 %429  ;;  %v174_v22 = vsel %vm165_vm9, %v2770_v55, 0 }
  0xaf   :  { %v2874_v23 = vpop.permute.xlu1 %431  ;;  %v178_v24 = vsel %vm166_vm7, %v2790_v62, 0  ;;  %v1396_v26 = vsel %vm165_vm9, %v2720_v29, 0  ;;  %v1400_v31 = vsel %vm166_vm7, %v2733_v42, 0  ;;  %v177_v32 = vsel %vm165_vm9, %v2786_v61, 0 }
  0xb0   :  { %v340_v33 = vsel %vm339_vm10, %v336_v6, %v2863_v18  ;;  %vm343_vm11 = vcmp.ne.s16.totalorder %v2863_v18, 0  ;;  %v1399_v36 = vsel %vm165_vm9, %v2727_v39, 0  ;;  %vm437_vm15 = vcmp.ne.s16.totalorder %v2874_v23, 0 }
  0xb1   :  { %1417 = vrot.lane.b32.xlu1 %v1391_v5, %s2637_s16  ;;  %vm342_vm12 = vcmp.ne.s16.totalorder %v340_v33, 0  ;;  %v346_v38 = vsel %vm343_vm11, %v2742_v44, 0  ;;  %v1547_v46 = vsel %vm343_vm11, %v2697_v15, 0  ;;  %v349_v54 = vsel %vm343_vm11, %v2758_v50, 0 }
  0xb2   :  { %1415 = vrot.lane.b32.xlu0 %v1390_v12, %s2637_s16  ;;  %v2880_v28 = vpop.permute.xlu0 %266  ;;  %v345_v40 = vsel %vm342_vm12, %v2737_v43, 0  ;;  %v1546_v47 = vsel %vm342_vm12, %v2694_v11, 0  ;;  %v348_v51 = vsel %vm342_vm12, %v2754_v49, 0  ;;  %v1549_v57 = vsel %vm342_vm12, %v2706_v21, 0 }
  0xb3   :  { %v2884_v30 = vpop.permute.xlu1 %268  ;;  %v1550_v59 = vsel %vm343_vm11, %v2712_v25, 0  ;;  %v351_v0 = vsel %vm342_vm12, %v2770_v55, 0  ;;  %v352_v5 = vsel %vm343_vm11, %v2774_v56, 0  ;;  %v1552_v6 = vsel %vm342_vm12, %v2720_v29, 0 }
  0xb4   :  { %v354_v10 = vsel %vm342_vm12, %v2786_v61, 0 }
  0xb5   :  { %1413 = vrot.lane.b32.xlu1 %v3692_v1, %s2637_s16 }
  0xb6   :  { %199 = vrot.lane.b32.xlu0 %v171_v14, %s2637_s16  ;;  %v2894_v35 = vpop.permute.xlu0 %531  ;;  %v355_v14 = vsel %vm343_vm11, %v2790_v62, 0 }
  0xb7   :  { %v2902_v37 = vpop.permute.xlu1 %533  ;;  %vm536_vm3 = vcmp.ne.s16.totalorder %v2894_v35, 0 }
  0xb8   :  { %vm538_vm2 = vcmp.ne.s16.totalorder %v2902_v37, 0 }
  0xb9   :  { %201 = vrot.lane.b32.xlu1 %v172_v8, %s2637_s16  ;;  %v1553_v8 = vsel %vm343_vm11, %v2722_v34, 0 }
  0xba   :  { %1421 = vrot.lane.b32.xlu0 %v1393_v17, %s2637_s16  ;;  %v2909_v41 = vpop.permute.xlu0 %1487  ;;  %v2995_v17 = vsel %vm433_vm13, %v2867_v19, %v2874_v23 }
  0xbb   :  { %v2913_v45 = vpop.permute.xlu1 %1489  ;;  %vm436_vm14 = vcmp.ne.s16.totalorder %v2995_v17, 0  ;;  %v1640_v17 = vsel %vm437_vm15, %v2733_v42, 0 }
  0xbc   :  { %v439_v19 = vsel %vm436_vm14, %v2737_v43, 0  ;;  %v1630_v33 = vsel %vm436_vm14, %v2694_v11, 0 }
  0xbd   :  { %1423 = vrot.lane.b32.xlu1 %v1394_v9, %s2637_s16 }
  0xbe   :  { %205 = vrot.lane.b32.xlu0 %v174_v22, %s2637_s16  ;;  %v2922_v48 = vpop.permute.xlu0 %272 }
  0xbf   :  { %v2929_v52 = vpop.permute.xlu1 %274 }
  0xc1   :  { %1419 = vrot.lane.b32.xlu1 %v3692_v1, %s2637_s16 }
  0xc2   :  { %1427 = vrot.lane.b32.xlu0 %v1396_v26, %s2637_s16  ;;  %v2931_v53 = vpop.permute.xlu0 %1493 }
  0xc3   :  { %v2940_v58 = vpop.permute.xlu1 %1495 }
  0xc5   :  { %207 = vrot.lane.b32.xlu1 %v175_v13, %s2637_s16 }
  0xc6   :  { %211 = vrot.lane.b32.xlu0 %v177_v32, %s2637_s16  ;;  %v2948_v60 = vpop.permute.xlu0 %270  ;;  %v440_v32 = vsel %vm437_vm15, %v2742_v44, 0 }
  0xc7   :  { %v2955_v2 = vpop.permute.xlu1 %1491 }
  0xc9   :  { %1429 = vrot.lane.b32.xlu1 %v1397_v16, %s2637_s16  ;;  %v1555_v16 = vsel %vm342_vm12, %v2727_v39, 0 }
  0xca   :  { %1433 = vrot.lane.b32.xlu0 %v1399_v36, %s2637_s16  ;;  %v2957_v4 = vpop.permute.xlu0 %278 }
  0xcb   :  { %v2966_v7 = vpop.permute.xlu1 %280 }
  0xcd   :  { %1425 = vrot.lane.b32.xlu1 %v3692_v1, %s2637_s16 }
  0xce   :  { %370 = vrot.lane.b32.xlu0 %v345_v40, %s2636_s15  ;;  %v2974_v9 = vpop.permute.xlu0 %1499 }
  0xcf   :  { %v2981_v12 = vpop.permute.xlu1 %1501 }
  0xd1   :  { %213 = vrot.lane.b32.xlu1 %v178_v24, %s2637_s16  ;;  %v1556_v24 = vsel %vm343_vm11, %v2733_v42, 0 }
  0xd2   :  { %1571 = vrot.lane.b32.xlu0 %v1546_v47, %s2636_s15  ;;  %v2983_v13 = vpop.permute.xlu0 %276 }
  0xd3   :  { %v2997_v22 = vpop.permute.xlu1 %1497 }
  0xd5   :  { %1435 = vrot.lane.b32.xlu1 %v1400_v31, %s2637_s16 }
  0xd6   :  { %376 = vrot.lane.b32.xlu0 %v348_v51, %s2636_s15  ;;  %v3006_v26 = vpop.permute.xlu0 %284 }
  0xd7   :  { %v3015_v18 = vpop.permute.xlu1 %286 }
  0xd9   :  { %1431 = vrot.lane.b32.xlu1 %v3692_v1, %s2637_s16 }
  0xda   :  { %1577 = vrot.lane.b32.xlu0 %v1549_v57, %s2636_s15  ;;  %v3017_v31 = vpop.permute.xlu0 %1505  ;;  %v1633_v57 = vsel %vm436_vm14, %v2706_v21, 0 }
  0xdb   :  { %v3027_v36 = vpop.permute.xlu1 %1507 }
  0xdd   :  { %372 = vrot.lane.b32.xlu1 %v346_v38, %s2636_s15  ;;  %v1631_v38 = vsel %vm437_vm15, %v2697_v15, 0 }
  0xde   :  { %374 = vrot.lane.b32.xlu0 %v3692_v1, %s2636_s15  ;;  %v3032_v40 = vpop.permute.xlu0 %282 }
  0xdf   :  { %v3040_v47 = vpop.permute.xlu1 %1503 }
  0xe1   :  { %1573 = vrot.lane.b32.xlu1 %v1547_v46, %s2636_s15  ;;  %v442_v46 = vsel %vm436_vm14, %v2754_v49, 0 }
  0xe2   :  { %382 = vrot.lane.b32.xlu0 %v351_v0, %s2636_s15  ;;  %v3045_v51 = vpop.permute.xlu0 %623 }
  0xe3   :  { %3695 = vst [vmem:[#allocation14_spill] sm:$0xff] %v3045_v51 }
  0xe5   :  { %1569 = vrot.lane.b32.xlu1 %v3692_v1, %s2636_s15 }
  0xe6   :  { %1583 = vrot.lane.b32.xlu0 %v1552_v6, %s2636_s15  ;;  %v192_v0 = vpop.permute.xlu0 %191 }
  0xe9   :  { %378 = vrot.lane.b32.xlu1 %v349_v54, %s2636_s15  ;;  %v443_v54 = vsel %vm437_vm15, %v2758_v50, 0 }
  0xea   :  { %380 = vrot.lane.b32.xlu0 %v3692_v1, %s2636_s15 }
  0xed   :  { %1579 = vrot.lane.b32.xlu1 %v1550_v59, %s2636_s15  ;;  %v3055_v59 = vpop.permute.xlu1 %625 }
  0xee   :  { %388 = vrot.lane.b32.xlu0 %v354_v10, %s2636_s15  ;;  %v445_v10 = vsel %vm436_vm14, %v2770_v55, 0  ;;  %vm630_vm9 = vcmp.ne.s16.totalorder %v3055_v59, 0 }
  0xf1   :  { %1575 = vrot.lane.b32.xlu1 %v3692_v1, %s2636_s15 }
  0xf2   :  { %1589 = vrot.lane.b32.xlu0 %v1555_v16, %s2636_s15 }
  0xf5   :  { %384 = vrot.lane.b32.xlu1 %v352_v5, %s2636_s15  ;;  %v1634_v5 = vsel %vm437_vm15, %v2712_v25, 0 }
  0xf6   :  { %386 = vrot.lane.b32.xlu0 %v3692_v1, %s2636_s15 }
  0xf9   :  { %1585 = vrot.lane.b32.xlu1 %v1553_v8, %s2636_s15  ;;  %v198_v8 = vpop.permute.xlu0 %197 }
  0xfa   :  { %464 = vrot.lane.b32.xlu0 %v439_v19, %s2635_s14  ;;  %v1636_v19 = vsel %vm436_vm14, %v2720_v29, 0 }
  0xfd   :  { %1581 = vrot.lane.b32.xlu1 %v3692_v1, %s2636_s15  ;;  %v3069_v16 = vpop.permute.xlu0 %203 }
  0xfe   :  { %1655 = vrot.lane.b32.xlu0 %v1630_v33, %s2635_s14 }
 0x101   :  { %390 = vrot.lane.b32.xlu1 %v355_v14, %s2636_s15  ;;  %v3079_v33 = vpop.permute.xlu0 %209 }
 0x102   :  { %462 = vrot.lane.b32.xlu0 %v3692_v1, %s2635_s14 }
 0x105   :  { %1591 = vrot.lane.b32.xlu1 %v1556_v24, %s2636_s15  ;;  %v446_v24 = vsel %vm437_vm15, %v2774_v56, 0 }
 0x106   :  { %470 = vrot.lane.b32.xlu0 %v442_v46, %s2635_s14 }
 0x109   :  { %1587 = vrot.lane.b32.xlu1 %v3692_v1, %s2636_s15 }
 0x10a   :  { %1661 = vrot.lane.b32.xlu0 %v1633_v57, %s2635_s14  ;;  %v2518_v57 = vld [vmem:[#allocation7 + $0x4] ss:$20 sps:$4 sm:$0xff]  }
 0x10b   :  { %1125 = vmatprep.mubr.bf16.mxu0 %v2518_v57  ;;  %2137 = vmatprep.mubr.bf16.mxu1 %v2518_v57  ;;  %v3108_v57 = vsel %vm486_vm0, %v2894_v35, %v2902_v37  ;;  %v3698_v37 = vld [vmem:[#allocation13_spill] sm:$0xff] }
 0x10c   :  { %vm537_vm1 = vcmp.ne.s16.totalorder %v3108_v57, 0 }
 0x10d   :  { %466 = vrot.lane.b32.xlu1 %v440_v32, %s2635_s14  ;;  %v540_v23 = vsel %vm537_vm1, %v2742_v44, 0 }
 0x10e   :  { %468 = vrot.lane.b32.xlu0 %v3692_v1, %s2635_s14 }
 0x111   :  { %1657 = vrot.lane.b32.xlu1 %v1631_v38, %s2635_s14  ;;  %v1637_v38 = vsel %vm437_vm15, %v2722_v34, 0 }
 0x112   :  { %476 = vrot.lane.b32.xlu0 %v445_v10, %s2635_s14 }
 0x115   :  { %1653 = vrot.lane.b32.xlu1 %v3692_v1, %s2635_s14 }
 0x116   :  { %1667 = vrot.lane.b32.xlu0 %v1636_v19, %s2635_s14  ;;  %v449_v19 = vsel %vm437_vm15, %v2790_v62, 0 }
 0x119   :  { %472 = vrot.lane.b32.xlu1 %v443_v54, %s2635_s14  ;;  %v3087_v54 = vpop.permute.xlu0 %368 }
 0x11a   :  { %474 = vrot.lane.b32.xlu0 %v3692_v1, %s2635_s14 }
 0x11d   :  { %1663 = vrot.lane.b32.xlu1 %v1634_v5, %s2635_s14  ;;  %v448_v5 = vsel %vm436_vm14, %v2786_v61, 0 }
 0x11e   :  { %482 = vrot.lane.b32.xlu0 %v448_v5, %s2635_s14 }
 0x11f   :  { %v196_v6 = vpop.permute.xlu1 %195 }
 0x121   :  { %1659 = vrot.lane.b32.xlu1 %v3692_v1, %s2635_s14 }
 0x123   :  { %v1418_v14 = vpop.permute.xlu1 %1417 }
 0x125   :  { %478 = vrot.lane.b32.xlu1 %v446_v24, %s2635_s14  ;;  %v194_v24 = vpop.permute.xlu0 %193 }
 0x126   :  { %v217_v61 = vsel %vm49_vm6, %v194_v24, %v196_v6  ;;  %v216_v51 = vsel %vm49_vm6, %v192_v0, %v194_v24  ;;  %v3696_v24 = vmov 0  }
 0x127   :  { %v1414_v32 = vpop.permute.xlu1 %1413  ;;  %1093 = vmatprep.subr.bf16.mxu0 %v217_v61 }
 0x128   :  { %1094 = vmatpush1.bf16.msra.mxu0 %v216_v51 }
 0x129   :  { %1669 = vrot.lane.b32.xlu1 %v1637_v38, %s2635_s14  ;;  %v1639_v38 = vsel %vm436_vm14, %v2727_v39, 0 }
 0x12a   :  { %1673 = vrot.lane.b32.xlu0 %v1639_v38, %s2635_s14 }
 0x12b   :  { %v202_v46 = vpop.permute.xlu1 %201 }
 0x12d   :  { %1665 = vrot.lane.b32.xlu1 %v3692_v1, %s2635_s14  ;;  %v1416_v1 = vpop.permute.xlu0 %1415 }
 0x12e   :  { %v1438_v6 = vsel %vm49_vm6, %v1416_v1, %v1418_v14  ;;  %v1437_v0 = vsel %vm49_vm6, %v1414_v32, %v1416_v1  ;;  %480 = vrot.lane.b32.xlu0 %v3696_v24, %s2635_s14  ;;  %v3128_v1 = vld [vmem:[#allocation2 + $0x18] sm:$0xff] }
 0x12f   :  { %v1424_v10 = vpop.permute.xlu1 %1423  ;;  %2105 = vmatprep.subr.bf16.mxu1 %v1438_v6 }
 0x130   :  { %2106 = vmatpush1.bf16.msra.mxu1 %v1437_v0 }
 0x131   :  { %484 = vrot.lane.b32.xlu1 %v449_v19, %s2635_s14  ;;  %v200_v51 = vpop.permute.xlu0 %199 }
 0x132   :  { %v219_v19 = vsel %vm49_vm6, %v200_v51, %v202_v46  ;;  %v218_v14 = vsel %vm49_vm6, %v198_v8, %v200_v51  ;;  %565 = vrot.lane.b32.xlu0 %v540_v23, %s2634_s13  ;;  %v1722_v8 = vsel %vm537_vm1, %v2697_v15, 0  ;;  %v539_v51 = vsel %vm536_vm3, %v2737_v43, 0 }
 0x133   :  { %v1420_v5 = vpop.permute.xlu1 %1419  ;;  %1095 = vmatprep.subr.bf16.mxu0 %v219_v19  ;;  %v1721_v19 = vsel %vm536_vm3, %v2694_v11, 0 }
 0x134   :  { %1096 = vmatpush1.bf16.msra.mxu0 %v218_v14 }
 0x135   :  { %1675 = vrot.lane.b32.xlu1 %v1640_v17, %s2635_s14  ;;  %v1422_v38 = vpop.permute.xlu0 %1421  ;;  %v541_v17 = vsel %vm538_vm2, %v3128_v1, 0 }
 0x136   :  { %v1440_v46 = vsel %vm49_vm6, %v1422_v38, %v1424_v10  ;;  %v1439_v6 = vsel %vm49_vm6, %v1420_v5, %v1422_v38  ;;  %1747 = vrot.lane.b32.xlu0 %v1722_v8, %s2634_s13 }
 0x137   :  { %v208_v61 = vpop.permute.xlu1 %207  ;;  %2107 = vmatprep.subr.bf16.mxu1 %v1440_v46  ;;  %v290_v46 = vsel %vm288_vm4, %v2880_v28, %v2884_v30  ;;  %v289_v30 = vsel %vm288_vm4, %v2816_v63, %v2880_v28  ;;  %v291_v63 = vsel %vm288_vm4, %v2948_v60, %v2922_v48  ;;  %v1509_v28 = vsel %vm288_vm4, %v2820_v3, %v2909_v41 }
 0x138   :  { %2108 = vmatpush1.bf16.msra.mxu1 %v1439_v6  ;;  %v546_v3 = vsel %vm537_vm1, %v2774_v56, 0  ;;  %v1511_v60 = vsel %vm288_vm4, %v2955_v2, %v2931_v53  ;;  %v295_v2 = vsel %vm288_vm4, %v3032_v40, %v3006_v26 }
 0x139   :  { %1671 = vrot.lane.b32.xlu1 %v3696_v24, %s2635_s14  ;;  %v206_v24 = vpop.permute.xlu0 %205 }
 0x13a   :  { %v221_v15 = vsel %vm49_vm6, %v206_v24, %v208_v61  ;;  %v220_v10 = vsel %vm49_vm6, %v3069_v16, %v206_v24  ;;  %563 = vrot.lane.b32.xlu0 %v539_v51, %s2634_s13 }
 0x13b   :  { %v1430_v32 = vpop.permute.xlu1 %1429  ;;  %1097 = vmatprep.subr.bf16.mxu0 %v221_v15  ;;  %v1510_v15 = vsel %vm288_vm4, %v2909_v41, %v2913_v45  ;;  %v3215_v41 = vld [vmem:[#allocation2 + $0x58] sm:$0xff] }
 0x13c   :  { %1098 = vmatpush1.bf16.msra.mxu0 %v220_v10 }
 0x13d   :  { %567 = vrot.lane.b32.xlu1 %v541_v17, %s2634_s13  ;;  %v1428_v23 = vpop.permute.xlu0 %1427 }
 0x13e   :  { %v1442_v14 = vsel %vm49_vm6, %v1428_v23, %v1430_v32  ;;  %788 = vrot.lane.b32.xlu0 %v2703_v20, %s2637_s16  ;;  %v3166_v32 = vld [vmem:[#allocation2 + $0x38] sm:$0xff] }
 0x13f   :  { %v1426_v0 = vpop.permute.xlu1 %1425  ;;  %2109 = vmatprep.subr.bf16.mxu1 %v1442_v14  ;;  %v1514_v14 = vsel %vm288_vm4, %v2974_v9, %v2981_v12  ;;  %v1513_v12 = vsel %vm288_vm4, %v2997_v22, %v2974_v9  ;;  %v1515_v22 = vsel %vm288_vm4, %v3040_v47, %v3017_v31  ;;  %v3268_v47 = vld [vmem:[#allocation2 + $0x78] sm:$0xff] }
 0x140   :  { %v1441_v38 = vsel %vm49_vm6, %v1426_v0, %v1428_v23  ;;  %v1512_v23 = vsel %vm288_vm4, %v2931_v53, %v2940_v58  ;;  %v293_v58 = vsel %vm288_vm4, %v2983_v13, %v2957_v4  ;;  %v1728_v53 = vsel %vm537_vm1, %v2722_v34, 0 }
 0x141   :  { %1749 = vrot.lane.b32.xlu1 %v541_v17, %s2634_s13  ;;  %2110 = vmatpush1.bf16.msra.mxu1 %v1441_v38  ;;  %v212_v61 = vpop.permute.xlu0 %211  ;;  %v543_v17 = vsel %vm537_vm1, %v2758_v50, 0  ;;  %v1516_v34 = vsel %vm288_vm4, %v3017_v31, %v3027_v36 }
 0x142   :  { %v222_v11 = vsel %vm49_vm6, %v3079_v33, %v212_v61  ;;  %571 = vrot.lane.b32.xlu0 %v543_v17, %s2634_s13  ;;  %v544_v33 = vsel %vm538_vm2, %v3166_v32, 0 }
 0x143   :  { %v214_v5 = vpop.permute.xlu1 %213 }
 0x144   :  { %v223_v8 = vsel %vm49_vm6, %v212_v61, %v214_v5  ;;  %v542_v5 = vsel %vm536_vm3, %v2754_v49, 0 }
 0x145   :  { %1745 = vrot.lane.b32.xlu1 %v1721_v19, %s2634_s13  ;;  %1099 = vmatprep.subr.bf16.mxu0 %v223_v8  ;;  %v1434_v6 = vpop.permute.xlu0 %1433  ;;  %v1727_v8 = vsel %vm536_vm3, %v2720_v29, 0 }
 0x146   :  { %1100 = vmatpush1.bf16.msra.mxu0 %v222_v11 }
 0x147   :  { %v1436_v16 = vpop.permute.xlu1 %1435  ;;  %1101 = vmatprep.subr.bf16.mxu0 %v290_v46 }
 0x148   :  { %v1444_v0 = vsel %vm49_vm6, %v1434_v6, %v1436_v16 }
 0x149   :  { %790 = vrot.lane.b32.xlu1 %v2716_v27, %s2637_s16  ;;  %v1725_v27 = vsel %vm537_vm1, %v2712_v25, 0  ;;  %2111 = vmatprep.subr.bf16.mxu1 %v1444_v0  ;;  %v292_v25 = vsel %vm288_vm4, %v2922_v48, %v2929_v52  ;;  %v371_v10 = vpop.permute.xlu0 %370  ;;  %v294_v52 = vsel %vm288_vm4, %v2957_v4, %v2966_v7  ;;  %v1724_v48 = vsel %vm536_vm3, %v2706_v21, 0  ;;  %v3697_v0 = vld [vmem:[#allocation14_spill] sm:$0xff] }
 0x14a   :  { %1753 = vrot.lane.b32.xlu0 %v1725_v27, %s2634_s13  ;;  %1102 = vmatpush1.bf16.msra.mxu0 %v289_v30  ;;  %v296_v7 = vsel %vm288_vm4, %v3006_v26, %v3015_v18  ;;  %v547_v4 = vsel %vm538_vm2, %v3215_v41, 0  ;;  %v545_v26 = vsel %vm536_vm3, %v2770_v55, 0  ;;  %v393_v9 = vsel %vm392_vm5, %v3087_v54, %v371_v10 }
 0x14b   :  { %v1432_v20 = vpop.permute.xlu1 %1431  ;;  %1103 = vmatprep.subr.bf16.mxu0 %v292_v25  ;;  %v549_v54 = vsel %vm537_vm1, %v2790_v62, 0  ;;  %v548_v25 = vsel %vm536_vm3, %v3698_v37, 0  ;;  %vm628_vm11 = vcmp.ne.s16.totalorder %v3697_v0, 0 }
 0x14c   :  { %v1443_v24 = vsel %vm49_vm6, %v1432_v20, %v1434_v6  ;;  %v550_v6 = vsel %vm538_vm2, %v3268_v47, 0 }
 0x14d   :  { %573 = vrot.lane.b32.xlu1 %v544_v33, %s2634_s13  ;;  %2112 = vmatpush1.bf16.msra.mxu1 %v1443_v24  ;;  %v1572_v19 = vpop.permute.xlu0 %1571  ;;  %v3284_v24 = vsel %vm392_vm5, %v3697_v0, %v3055_v59 }
 0x14e   :  { %2113 = vmatprep.subr.bf16.mxu1 %v1510_v15  ;;  %569 = vrot.lane.b32.xlu0 %v542_v5, %s2634_s13  ;;  %vm629_vm7 = vcmp.ne.s16.totalorder %v3284_v24, 0  ;;  %v3409_v24 = vld [vmem:[#allocation2 + $0x68] sm:$0xff] }
 0x14f   :  { %v373_v51 = vpop.permute.xlu1 %372  ;;  %1104 = vmatpush1.bf16.msra.mxu0 %v291_v63  ;;  %v632_v5 = vsel %vm629_vm7, %v2742_v44, 0 }
 0x150   :  { %1105 = vmatprep.subr.bf16.mxu0 %v294_v52  ;;  %v394_v18 = vsel %vm392_vm5, %v371_v10, %v373_v51  ;;  %v1730_v10 = vsel %vm536_vm3, %v2727_v39, 0  ;;  %v633_v52 = vsel %vm630_vm9, %v3128_v1, 0 }
 0x151   :  { %1755 = vrot.lane.b32.xlu1 %v544_v33, %s2634_s13  ;;  %2114 = vmatpush1.bf16.msra.mxu1 %v1509_v28  ;;  %v377_v38 = vpop.permute.xlu0 %376  ;;  %v1731_v33 = vsel %vm537_vm1, %v2733_v42, 0 }
 0x152   :  { %2115 = vmatprep.subr.bf16.mxu1 %v1512_v23  ;;  %577 = vrot.lane.b32.xlu0 %v546_v3, %s2634_s13 }
 0x153   :  { %v1574_v45 = vpop.permute.xlu1 %1573  ;;  %1106 = vmatpush1.bf16.msra.mxu0 %v293_v58  ;;  %v631_v58 = vsel %vm628_vm11, %v2737_v43, 0 }
 0x154   :  { %1107 = vmatprep.subr.bf16.mxu0 %v296_v7  ;;  %v1594_v61 = vsel %vm392_vm5, %v1572_v19, %v1574_v45  ;;  %v3304_v45 = vld [vmem:[#allocation2 + $0x10] sm:$0xff] }
 0x155   :  { %1751 = vrot.lane.b32.xlu1 %v1724_v48, %s2634_s13  ;;  %2116 = vmatpush1.bf16.msra.mxu1 %v1511_v60  ;;  %v1578_v16 = vpop.permute.xlu0 %1577  ;;  %v1806_v23 = vsel %vm629_vm7, %v3304_v45, 0 }
 0x156   :  { %2117 = vmatprep.subr.bf16.mxu1 %v1514_v14  ;;  %1759 = vrot.lane.b32.xlu0 %v1728_v53, %s2634_s13 }
 0x157   :  { %v1570_v21 = vpop.permute.xlu1 %1569  ;;  %1108 = vmatpush1.bf16.msra.mxu0 %v295_v2 }
 0x158   :  { %1109 = vmatprep.subr.bf16.mxu0 %v394_v18  ;;  %v1593_v11 = vsel %vm392_vm5, %v1570_v21, %v1572_v19  ;;  %v3322_v21 = vld [vmem:[#allocation2 + $0x8] sm:$0xff] }
 0x159   :  { %579 = vrot.lane.b32.xlu1 %v547_v4, %s2634_s13  ;;  %2118 = vmatpush1.bf16.msra.mxu1 %v1513_v12  ;;  %v375_v17 = vpop.permute.xlu0 %374  ;;  %v3334_v12 = vld [vmem:[#allocation2 + $0x30] sm:$0xff] }
 0x15a   :  { %2119 = vmatprep.subr.bf16.mxu1 %v1516_v34  ;;  %575 = vrot.lane.b32.xlu0 %v545_v26, %s2634_s13  ;;  %v395_v31 = vsel %vm392_vm5, %v375_v17, %v377_v38  ;;  %v636_v34 = vsel %vm630_vm9, %v3166_v32, 0 }
 0x15b   :  { %v379_v13 = vpop.permute.xlu1 %378  ;;  %1110 = vmatpush1.bf16.msra.mxu0 %v393_v9 }
 0x15c   :  { %v396_v40 = vsel %vm392_vm5, %v377_v38, %v379_v13  ;;  %v1805_v38 = vsel %vm628_vm11, %v3322_v21, 0 }
 0x15d   :  { %1761 = vrot.lane.b32.xlu1 %v547_v4, %s2634_s13  ;;  %2120 = vmatpush1.bf16.msra.mxu1 %v1515_v22  ;;  %v383_v29 = vpop.permute.xlu0 %382  ;;  %v635_v4 = vsel %vm629_vm7, %v2758_v50, 0 }
 0x15e   :  { %1111 = vmatprep.subr.bf16.mxu0 %v396_v40  ;;  %2121 = vmatprep.subr.bf16.mxu1 %v1594_v61  ;;  %v3351_v61 = vld [vmem:[#allocation2 + $0x28] sm:$0xff] }
 0x15f   :  { %v1580_v36 = vpop.permute.xlu1 %1579  ;;  %583 = vrot.lane.b32.xlu0 %v549_v54, %s2634_s13  ;;  %1112 = vmatpush1.bf16.msra.mxu0 %v395_v31  ;;  %v1808_v54 = vsel %vm628_vm11, %v3351_v61, 0  ;;  %v638_v31 = vsel %vm629_vm7, %v2774_v56, 0 }
 0x160   :  { %v1596_v46 = vsel %vm392_vm5, %v1578_v16, %v1580_v36  ;;  %v634_v36 = vsel %vm628_vm11, %v2754_v49, 0 }
 0x161   :  { %1757 = vrot.lane.b32.xlu1 %v1727_v8, %s2634_s13  ;;  %2122 = vmatpush1.bf16.msra.mxu1 %v1593_v11  ;;  %v1584_v51 = vpop.permute.xlu0 %1583 }
 0x162   :  { %2123 = vmatprep.subr.bf16.mxu1 %v1596_v46  ;;  %v3363_v46 = vld [vmem:[#allocation2 + $0x50] sm:$0xff] }
 0x163   :  { %v1576_v20 = vpop.permute.xlu1 %1575  ;;  %1765 = vrot.lane.b32.xlu0 %v1731_v33, %s2634_s13  ;;  %v639_v33 = vsel %vm630_vm9, %v3215_v41, 0 }
 0x164   :  { %v1595_v27 = vsel %vm392_vm5, %v1576_v20, %v1578_v16  ;;  %v1809_v16 = vsel %vm629_vm7, %v3334_v12, 0 }
 0x165   :  { %585 = vrot.lane.b32.xlu1 %v550_v6, %s2634_s13  ;;  %2124 = vmatpush1.bf16.msra.mxu1 %v1595_v27  ;;  %v381_v15 = vpop.permute.xlu0 %380  ;;  %v1812_v27 = vsel %vm629_vm7, %v3363_v46, 0 }
 0x166   :  { %v397_v63 = vsel %vm392_vm5, %v381_v15, %v383_v29  ;;  %v3380_v15 = vld [vmem:[#allocation2 + $0x48] sm:$0xff] }
 0x167   :  { %v385_v30 = vpop.permute.xlu1 %384  ;;  %581 = vrot.lane.b32.xlu0 %v548_v25, %s2634_s13 }
 0x168   :  { %v398_v42 = vsel %vm392_vm5, %v383_v29, %v385_v30 }
 0x169   :  { %1767 = vrot.lane.b32.xlu1 %v550_v6, %s2634_s13  ;;  %1113 = vmatprep.subr.bf16.mxu0 %v398_v42  ;;  %v389_v39 = vpop.permute.xlu0 %388  ;;  %v637_v42 = vsel %vm628_vm11, %v2770_v55, 0 }
 0x16a   :  { %1114 = vmatpush1.bf16.msra.mxu0 %v397_v63  ;;  %v1811_v63 = vsel %vm628_vm11, %v3380_v15, 0 }
 0x16b   :  { %v1586_v57 = vpop.permute.xlu1 %1585  ;;  %657 = vrot.lane.b32.xlu0 %v632_v5, %s2633_s12 }
 0x16c   :  { %v1598_v28 = vsel %vm392_vm5, %v1584_v51, %v1586_v57 }
 0x16d   :  { %1763 = vrot.lane.b32.xlu1 %v1730_v10, %s2634_s13  ;;  %2125 = vmatprep.subr.bf16.mxu1 %v1598_v28  ;;  %v1590_v3 = vpop.permute.xlu0 %1589  ;;  %v641_v28 = vsel %vm629_vm7, %v2790_v62, 0 }
 0x16f   :  { %v1582_v35 = vpop.permute.xlu1 %1581  ;;  %1831 = vrot.lane.b32.xlu0 %v1806_v23, %s2633_s12 }
 0x170   :  { %v1597_v19 = vsel %vm392_vm5, %v1582_v35, %v1584_v51 }
 0x171   :  { %659 = vrot.lane.b32.xlu1 %v633_v52, %s2633_s12  ;;  %2126 = vmatpush1.bf16.msra.mxu1 %v1597_v19  ;;  %v387_v14 = vpop.permute.xlu0 %386 }
 0x172   :  { %v399_v53 = vsel %vm392_vm5, %v387_v14, %v389_v39  ;;  %v640_v14 = vsel %vm628_vm11, %v3698_v37, 0 }
 0x173   :  { %v391_v48 = vpop.permute.xlu1 %390  ;;  %655 = vrot.lane.b32.xlu0 %v631_v58, %s2633_s12 }
 0x174   :  { %v400_v60 = vsel %vm392_vm5, %v389_v39, %v391_v48  ;;  %v642_v48 = vsel %vm630_vm9, %v3268_v47, 0 }
 0x175   :  { %1833 = vrot.lane.b32.xlu1 %v633_v52, %s2633_s12  ;;  %1115 = vmatprep.subr.bf16.mxu0 %v400_v60  ;;  %v465_v18 = vpop.permute.xlu0 %464  ;;  %v3392_v52 = vld [vmem:[#allocation2 + $0x70] sm:$0xff] }
 0x176   :  { %1116 = vmatpush1.bf16.msra.mxu0 %v399_v53  ;;  %v1814_v53 = vsel %vm628_vm11, %v3409_v24, 0 }
 0x177   :  { %v1592_v7 = vpop.permute.xlu1 %1591  ;;  %663 = vrot.lane.b32.xlu0 %v635_v4, %s2633_s12 }
 0x178   :  { %v1600_v2 = vsel %vm392_vm5, %v1590_v3, %v1592_v7 }
 0x179   :  { %1829 = vrot.lane.b32.xlu1 %v1805_v38, %s2633_s12  ;;  %2127 = vmatprep.subr.bf16.mxu1 %v1600_v2  ;;  %v1656_v22 = vpop.permute.xlu0 %1655 }
 0x17b   :  { %v1588_v13 = vpop.permute.xlu1 %1587  ;;  %1837 = vrot.lane.b32.xlu0 %v1809_v16, %s2633_s12 }
 0x17c   :  { %v1599_v26 = vsel %vm392_vm5, %v1588_v13, %v1590_v3  ;;  %v1815_v3 = vsel %vm629_vm7, %v3392_v52, 0 }
 0x17d   :  { %665 = vrot.lane.b32.xlu1 %v636_v34, %s2633_s12  ;;  %2128 = vmatpush1.bf16.msra.mxu1 %v1599_v26  ;;  %v463_v8 = vpop.permute.xlu0 %462 }
 0x17e   :  { %v487_v11 = vsel %vm486_vm0, %v463_v8, %v465_v18  ;;  %v2516_v8 = vld [vmem:[#allocation7] ss:$20 sps:$4 sm:$0xff]  }
 0x17f   :  { %v467_v9 = vpop.permute.xlu1 %466  ;;  %661 = vrot.lane.b32.xlu0 %v634_v36, %s2633_s12 }
 0x180   :  { %v488_v40 = vsel %vm486_vm0, %v465_v18, %v467_v9 }
 0x181   :  { %1839 = vrot.lane.b32.xlu1 %v636_v34, %s2633_s12  ;;  %1117 = vmatprep.subr.bf16.mxu0 %v488_v40  ;;  %v471_v6 = vpop.permute.xlu0 %470 }
 0x182   :  { %1118 = vmatpush1.bf16.msra.mxu0 %v487_v11 }
 0x183   :  { %v1658_v17 = vpop.permute.xlu1 %1657  ;;  %669 = vrot.lane.b32.xlu0 %v638_v31, %s2633_s12 }
 0x184   :  { %v1678_v20 = vsel %vm486_vm0, %v1656_v22, %v1658_v17 }
 0x185   :  { %1835 = vrot.lane.b32.xlu1 %v1808_v54, %s2633_s12  ;;  %2129 = vmatprep.subr.bf16.mxu1 %v1678_v20  ;;  %v1662_v25 = vpop.permute.xlu0 %1661 }
 0x187   :  { %v1654_v29 = vpop.permute.xlu1 %1653  ;;  %1843 = vrot.lane.b32.xlu0 %v1812_v27, %s2633_s12  ;;  %v2521_v27 = vld [vmem:[#allocation7 + $0x28] ss:$20 sps:$4 sm:$0xff]  }
 0x188   :  { %v1677_v30 = vsel %vm486_vm0, %v1654_v29, %v1656_v22 }
 0x189   :  { %671 = vrot.lane.b32.xlu1 %v639_v33, %s2633_s12  ;;  %2130 = vmatpush1.bf16.msra.mxu1 %v1677_v30  ;;  %v469_v5 = vpop.permute.xlu0 %468  ;;  %v2545_v30 = vld [vmem:[#allocation2 + $0x8] sm:$0xff] }
 0x18a   :  { %v489_v35 = vsel %vm486_vm0, %v469_v5, %v471_v6 }
 0x18b   :  { %v473_v51 = vpop.permute.xlu1 %472  ;;  %667 = vrot.lane.b32.xlu0 %v637_v42, %s2633_s12  ;;  %v2546_v42 = vld [vmem:[#allocation2 + $0x30] sm:$0xff] }
 0x18c   :  { %v490_v57 = vsel %vm486_vm0, %v471_v6, %v473_v51  ;;  %v2544_v6 = vld [vmem:[#allocation2 + $0x10] sm:$0xff] }
 0x18d   :  { %1845 = vrot.lane.b32.xlu1 %v639_v33, %s2633_s12  ;;  %1119 = vmatprep.subr.bf16.mxu0 %v490_v57  ;;  %v477_v19 = vpop.permute.xlu0 %476  ;;  %v2519_v33 = vld [vmem:[#allocation7 + $0x2c] ss:$20 sps:$4 sm:$0xff]  }
 0x18e   :  { %1120 = vmatpush1.bf16.msra.mxu0 %v489_v35  ;;  %v2547_v57 = vld [vmem:[#allocation2 + $0x28] sm:$0xff]  ;;  %v2524_v35 = vld [vmem:[#allocation7 + $0x50] ss:$20 sps:$4 sm:$0xff]  }
 0x18f   :  { %v1664_v10 = vpop.permute.xlu1 %1663  ;;  %675 = vrot.lane.b32.xlu0 %v641_v28, %s2633_s12  ;;  %v2548_v28 = vld [vmem:[#allocation2 + $0x50] sm:$0xff] }
 0x190   :  { %v1680_v39 = vsel %vm486_vm0, %v1662_v25, %v1664_v10 }
 0x191   :  { %1841 = vrot.lane.b32.xlu1 %v1811_v63, %s2633_s12  ;;  %2131 = vmatprep.subr.bf16.mxu1 %v1680_v39  ;;  %v1668_v7 = vpop.permute.xlu0 %1667  ;;  %v2522_v63 = vld [vmem:[#allocation7 + $0x54] ss:$20 sps:$4 sm:$0xff]  }
 0x192   :  { %v2549_v39 = vld [vmem:[#allocation2 + $0x48] sm:$0xff] }
 0x193   :  { %v1660_v23 = vpop.permute.xlu1 %1659  ;;  %1849 = vrot.lane.b32.xlu0 %v1815_v3, %s2633_s12  ;;  %v2550_v3 = vld [vmem:[#allocation2 + $0x70] sm:$0xff] }
 0x194   :  { %v1679_v58 = vsel %vm486_vm0, %v1660_v23, %v1662_v25 }
 0x195   :  { %677 = vrot.lane.b32.xlu1 %v642_v48, %s2633_s12  ;;  %2132 = vmatpush1.bf16.msra.mxu1 %v1679_v58  ;;  %v475_v4 = vpop.permute.xlu0 %474 }
 0x196   :  { %v491_v2 = vsel %vm486_vm0, %v475_v4, %v477_v19  ;;  %v2525_v4 = vld [vmem:[#allocation7 + $0x7c] ss:$20 sps:$4 sm:$0xff]  }
 0x197   :  { %v479_v60 = vpop.permute.xlu1 %478  ;;  %673 = vrot.lane.b32.xlu0 %v640_v14, %s2633_s12 }
 0x198   :  { %v492_v59 = vsel %vm486_vm0, %v477_v19, %v479_v60  ;;  %v2551_v60 = vld [vmem:[#allocation2 + $0x68] sm:$0xff] }
 0x199   :  { %1851 = vrot.lane.b32.xlu1 %v642_v48, %s2633_s12  ;;  %1121 = vmatprep.subr.bf16.mxu0 %v492_v59  ;;  %v483_v34 = vpop.permute.xlu0 %482 }
 0x19a   :  { %1122 = vmatpush1.bf16.msra.mxu0 %v491_v2 }
 0x19b   :  { %v1670_v38 = vpop.permute.xlu1 %1669  ;;  %729 = vrot.lane.b32.xlu0 %v2742_v44, %s2638_s17 }
 0x19c   :  { %v1682_v13 = vsel %vm486_vm0, %v1668_v7, %v1670_v38 }
 0x19d   :  { %1847 = vrot.lane.b32.xlu1 %v1814_v53, %s2633_s12  ;;  %2133 = vmatprep.subr.bf16.mxu1 %v1682_v13  ;;  %v1674_v26 = vpop.permute.xlu0 %1673 }
 0x19f   :  { %v1666_v18 = vpop.permute.xlu1 %1665  ;;  %1903 = vrot.lane.b32.xlu0 %v3304_v45, %s2638_s17 }
 0x1a0   :  { %v1681_v16 = vsel %vm486_vm0, %v1666_v18, %v1668_v7  ;;  %v2527_v18 = vld [vmem:[#allocation7 + $0x78] ss:$20 sps:$4 sm:$0xff]  }
 0x1a1   :  { %731 = vrot.lane.b32.xlu1 %v3128_v1, %s2638_s17  ;;  %2134 = vmatpush1.bf16.msra.mxu1 %v1681_v16  ;;  %v481_v36 = vpop.permute.xlu0 %480 }
 0x1a2   :  { %v493_v40 = vsel %vm486_vm0, %v481_v36, %v483_v34  ;;  %v2530_v36 = vld [vmem:[#allocation7 + $0xc] ss:$20 sps:$4 sm:$0xff]  }
 0x1a3   :  { %v485_v0 = vpop.permute.xlu1 %484  ;;  %727 = vrot.lane.b32.xlu0 %v2737_v43, %s2638_s17 }
 0x1a4   :  { %v494_v9 = vsel %vm486_vm0, %v483_v34, %v485_v0 }
 0x1a5   :  { %1905 = vrot.lane.b32.xlu1 %v3128_v1, %s2638_s17  ;;  %1123 = vmatprep.subr.bf16.mxu0 %v494_v9  ;;  %v566_v31 = vpop.permute.xlu0 %565 }
 0x1a6   :  { %1124 = vmatpush1.bf16.msra.mxu0 %v493_v40 }
 0x1a7   :  { %v1676_v22 = vpop.permute.xlu1 %1675  ;;  %735 = vrot.lane.b32.xlu0 %v2758_v50, %s2638_s17  ;;  %1166 = vmatprep.subr.bf16.mxu0 %v2742_v44 }
 0x1a8   :  { %v1684_v17 = vsel %vm486_vm0, %v1674_v26, %v1676_v22 }
 0x1a9   :  { %1901 = vrot.lane.b32.xlu1 %v3322_v21, %s2638_s17  ;;  %2135 = vmatprep.subr.bf16.mxu1 %v1684_v17  ;;  %v1748_v29 = vpop.permute.xlu0 %1747 }
 0x1aa   :  { %1126 = vmatmul.mubr.bf16.vlgmr.msra.gmra.mrb[0].mxu0 %v2516_v8 }
 0x1ab   :  { %v1672_v54 = vpop.permute.xlu1 %1671  ;;  %1909 = vrot.lane.b32.xlu0 %v3334_v12, %s2638_s17  ;;  %1167 = vmatpush1.bf16.msra.mxu0 %v2737_v43 }
 0x1ac   :  { %v1683_v11 = vsel %vm486_vm0, %v1672_v54, %v1674_v26  ;;  %1168 = vmatprep.subr.bf16.mxu0 %v2758_v50  ;;  %1135 = vmatprep.mubr.bf16.mxu0 %v2519_v33 }
 0x1ad   :  { %737 = vrot.lane.b32.xlu1 %v3166_v32, %s2638_s17  ;;  %2136 = vmatpush1.bf16.msra.mxu1 %v1683_v11  ;;  %v564_v25 = vpop.permute.xlu0 %563 }
 0x1ae   :  { %2178 = vmatprep.subr.bf16.mxu1 %v2544_v6  ;;  %v587_v58 = vsel %vm433_vm13, %v564_v25, %v566_v31 }
 0x1af   :  { %v568_v20 = vpop.permute.xlu1 %567  ;;  %733 = vrot.lane.b32.xlu0 %v2754_v49, %s2638_s17  ;;  %1169 = vmatpush1.bf16.msra.mxu0 %v2754_v49 }
 0x1b0   :  { %2138 = vmatmul.mubr.bf16.vlgmr.msra.gmra.mrb[0].mxu1 %v2516_v8  ;;  %1170 = vmatprep.subr.bf16.mxu0 %v2774_v56  ;;  %v588_v23 = vsel %vm433_vm13, %v566_v31, %v568_v20 }
 0x1b1   :  { %1911 = vrot.lane.b32.xlu1 %v3166_v32, %s2638_s17  ;;  %2179 = vmatpush1.bf16.msra.mxu1 %v2545_v30  ;;  %v3454_v5 = vpop.permute.xlu0 %788 }
 0x1b2   :  { %2180 = vmatprep.subr.bf16.mxu1 %v2546_v42  ;;  %1136 = vmatmul.mubr.bf16.gmra.mrb[4].mxu0 %v2521_v27  ;;  %vm793_vm14 = vcmp.ne.s16.totalorder %v3454_v5, 0 }
 0x1b3   :  { %v1750_v51 = vpop.permute.xlu1 %1749  ;;  %741 = vrot.lane.b32.xlu0 %v2774_v56, %s2638_s17  ;;  %2147 = vmatprep.mubr.bf16.mxu1 %v2519_v33  ;;  %v1961_v25 = vsel %vm793_vm14, %v3322_v21, 0 }
 0x1b4   :  { %1171 = vmatpush1.bf16.msra.mxu0 %v2770_v55  ;;  %1145 = vmatprep.mubr.bf16.mxu0 %v2522_v63  ;;  %v1770_v7 = vsel %vm433_vm13, %v1748_v29, %v1750_v51 }
 0x1b5   :  { %1907 = vrot.lane.b32.xlu1 %v3351_v61, %s2638_s17  ;;  %2181 = vmatpush1.bf16.msra.mxu1 %v2547_v57  ;;  %v572_v48 = vpop.permute.xlu0 %571 }
 0x1b6   :  { %1172 = vmatprep.subr.bf16.mxu0 %v2790_v62  ;;  %2182 = vmatprep.subr.bf16.mxu1 %v2548_v28 }
 0x1b7   :  { %v1746_v10 = vpop.permute.xlu1 %1745  ;;  %1915 = vrot.lane.b32.xlu0 %v3363_v46, %s2638_s17 }
 0x1b8   :  { %2148 = vmatmul.mubr.bf16.gmra.mrb[4].mxu1 %v2521_v27  ;;  %1173 = vmatpush1.bf16.msra.mxu0 %v3698_v37  ;;  %v1769_v53 = vsel %vm433_vm13, %v1746_v10, %v1748_v29 }
 0x1b9   :  { %743 = vrot.lane.b32.xlu1 %v3215_v41, %s2638_s17  ;;  %2183 = vmatpush1.bf16.msra.mxu1 %v2549_v39 }
 0x1ba   :  { %1174 = vmatprep.subr.bf16.mxu0 %v588_v23  ;;  %2184 = vmatprep.subr.bf16.mxu1 %v2550_v3  ;;  %v1964_v3 = vsel %vm793_vm14, %v3351_v61, 0 }
 0x1bb   :  { %v3463_v19 = vpop.permute.xlu1 %790  ;;  %739 = vrot.lane.b32.xlu0 %v2770_v55, %s2638_s17  ;;  %1146 = vmatmul.mubr.bf16.gmra.mrb[8].mxu0 %v2524_v35 }
 0x1bc   :  { %2157 = vmatprep.mubr.bf16.mxu1 %v2522_v63  ;;  %1175 = vmatpush1.bf16.msra.mxu0 %v587_v58  ;;  %v1754_v59 = vpop.permute.xlu0 %1753  ;;  %v3486_v0 = vsel %vm49_vm6, %v3454_v5, %v3463_v19  ;;  %vm795_vm6 = vcmp.ne.s16.totalorder %v3463_v19, 0 }
 0x1bd   :  { %1917 = vrot.lane.b32.xlu1 %v3215_v41, %s2638_s17  ;;  %2185 = vmatpush1.bf16.msra.mxu1 %v2551_v60  ;;  %vm794_vm12 = vcmp.ne.s16.totalorder %v3486_v0, 0  ;;  %v798_v29 = vsel %vm795_vm6, %v3128_v1, 0  ;;  %v796_v1 = vsel %vm793_vm14, %v2737_v43, 0  ;;  %v801_v28 = vsel %vm795_vm6, %v3166_v32, 0 }
 0x1be   :  { %2186 = vmatprep.subr.bf16.mxu1 %v1770_v7  ;;  %1155 = vmatprep.mubr.bf16.mxu0 %v2525_v4  ;;  %v797_v8 = vsel %vm794_vm12, %v2742_v44, 0  ;;  %v1962_v44 = vsel %vm794_vm12, %v3304_v45, 0  ;;  %v800_v42 = vsel %vm794_vm12, %v2758_v50, 0  ;;  %v1965_v21 = vsel %vm794_vm12, %v3334_v12, 0 }
 0x1bf   :  { %v574_v14 = vpop.permute.xlu1 %573  ;;  %747 = vrot.lane.b32.xlu0 %v2790_v62, %s2638_s17  ;;  %v799_v32 = vsel %vm793_vm14, %v2754_v49, 0  ;;  %v803_v58 = vsel %vm794_vm12, %v2774_v56, 0  ;;  %v1968_v61 = vsel %vm794_vm12, %v3363_v46, 0  ;;  %v1970_v0 = vsel %vm793_vm14, %v3409_v24, 0 }
 0x1c0   :  { %v590_v38 = vsel %vm433_vm13, %v572_v48, %v574_v14  ;;  %2158 = vmatmul.mubr.bf16.gmra.mrb[8].mxu1 %v2524_v35  ;;  %v570_v13 = vpop.permute.xlu0 %569 }
 0x1c1   :  { %1913 = vrot.lane.b32.xlu1 %v3380_v15, %s2638_s17  ;;  %1176 = vmatprep.subr.bf16.mxu0 %v590_v38  ;;  %v589_v34 = vsel %vm433_vm13, %v570_v13, %v572_v48  ;;  %v1967_v13 = vsel %vm793_vm14, %v3380_v15, 0  ;;  %v1971_v15 = vsel %vm794_vm12, %v3392_v52, 0 }
 0x1c2   :  { %2187 = vmatpush1.bf16.msra.mxu1 %v1769_v53  ;;  %2167 = vmatprep.mubr.bf16.mxu1 %v2525_v4 }
 0x1c3   :  { %v1756_v2 = vpop.permute.xlu1 %1755  ;;  %1921 = vrot.lane.b32.xlu0 %v3392_v52, %s2638_s17  ;;  %1177 = vmatpush1.bf16.msra.mxu0 %v589_v34 }
 0x1c4   :  { %v1772_v16 = vsel %vm433_vm13, %v1754_v59, %v1756_v2  ;;  %v578_v9 = vpop.permute.xlu0 %577  ;;  %1156 = vmatmul.mubr.bf16.gmra.mrb[12].mxu0 %v2527_v18 }
 0x1c5   :  { %749 = vrot.lane.b32.xlu1 %v3268_v47, %s2638_s17  ;;  %2188 = vmatprep.subr.bf16.mxu1 %v1772_v16 }
 0x1c6   :  { %1198 = vmatprep.mubr.bf16.mxu0 %v2530_v36 }
 0x1c7   :  { %v1752_v26 = vpop.permute.xlu1 %1751  ;;  %745 = vrot.lane.b32.xlu0 %v3698_v37, %s2638_s17 }
 0x1c8   :  { %v1771_v22 = vsel %vm433_vm13, %v1752_v26, %v1754_v59  ;;  %v1760_v17 = vpop.permute.xlu0 %1759  ;;  %2168 = vmatmul.mubr.bf16.gmra.mrb[12].mxu1 %v2527_v18  ;;  %v804_v59 = vsel %vm795_vm6, %v3215_v41, 0  ;;  %v802_v41 = vsel %vm793_vm14, %v2770_v55, 0  ;;  %v806_v18 = vsel %vm794_vm12, %v2790_v62, 0 }
 0x1c9   :  { %1923 = vrot.lane.b32.xlu1 %v3268_v47, %s2638_s17  ;;  %2189 = vmatpush1.bf16.msra.mxu1 %v1771_v22 }
 0x1ca   :  { %2210 = vmatprep.mubr.bf16.mxu1 %v2530_v36 }
 0x1cb   :  { %v580_v40 = vpop.permute.xlu1 %579  ;;  %822 = vrot.lane.b32.xlu0 %v797_v8, %s2632_s1 }
 0x1cc   :  { %v592_v54 = vsel %vm433_vm13, %v578_v9, %v580_v40  ;;  %v576_v11 = vpop.permute.xlu0 %575 }
 0x1cd   :  { %1919 = vrot.lane.b32.xlu1 %v3409_v24, %s2638_s17  ;;  %1178 = vmatprep.subr.bf16.mxu0 %v592_v54  ;;  %v591_v20 = vsel %vm433_vm13, %v576_v11, %v578_v9  ;;  %v807_v9 = vsel %vm795_vm6, %v3268_v47, 0  ;;  %v805_v47 = vsel %vm793_vm14, %v3698_v37, 0 }
 0x1ce   :  { %1179 = vmatpush1.bf16.msra.mxu0 %v591_v20 }
 0x1cf   :  { %v1762_v31 = vpop.permute.xlu1 %1761  ;;  %1987 = vrot.lane.b32.xlu0 %v1962_v44, %s2632_s1 }
 0x1d0   :  { %v1774_v6 = vsel %vm433_vm13, %v1760_v17, %v1762_v31 }
 0x1d1   :  { %824 = vrot.lane.b32.xlu1 %v798_v29, %s2632_s1  ;;  %2190 = vmatprep.subr.bf16.mxu1 %v1774_v6  ;;  %v584_v27 = vpop.permute.xlu0 %583 }
 0x1d3   :  { %v1758_v33 = vpop.permute.xlu1 %1757  ;;  %820 = vrot.lane.b32.xlu0 %v796_v1, %s2632_s1  ;;  %v96_v1 = vld [vmem:[%s3687_s2] sm:$0xff] }
 0x1d4   :  { %v1773_v30 = vsel %vm433_vm13, %v1758_v33, %v1760_v17 }
 0x1d5   :  { %1989 = vrot.lane.b32.xlu1 %v798_v29, %s2632_s1  ;;  %2191 = vmatpush1.bf16.msra.mxu1 %v1773_v30  ;;  %v1766_v51 = vpop.permute.xlu0 %1765 }
 0x1d7   :  { %v586_v45 = vpop.permute.xlu1 %585  ;;  %828 = vrot.lane.b32.xlu0 %v800_v42, %s2632_s1  ;;  %v98_v42 = vld [vmem:[%s3687_s2 + $0x10] sm:$0xff] }
 0x1d8   :  { %v594_v57 = vsel %vm433_vm13, %v584_v27, %v586_v45  ;;  %v97_v45 = vld [vmem:[%s3687_s2 + $0x8] sm:$0xff] }
 0x1d9   :  { %1985 = vrot.lane.b32.xlu1 %v1961_v25, %s2632_s1  ;;  %1180 = vmatprep.subr.bf16.mxu0 %v594_v57  ;;  %v582_v10 = vpop.permute.xlu0 %581  ;;  %v99_v57 = vld [vmem:[%s3687_s2 + $0x18] sm:$0xff] }
 0x1da   :  { %v593_v63 = vsel %vm433_vm13, %v582_v10, %v584_v27 }
 0x1db   :  { %v1768_v43 = vpop.permute.xlu1 %1767  ;;  %1993 = vrot.lane.b32.xlu0 %v1965_v21, %s2632_s1  ;;  %1181 = vmatpush1.bf16.msra.mxu0 %v593_v63  ;;  %v101_v21 = vld [vmem:[%s3687_s2 + $0x28] sm:$0xff] }
 0x1dc   :  { %v1776_v50 = vsel %vm433_vm13, %v1766_v51, %v1768_v43 }
 0x1dd   :  { %830 = vrot.lane.b32.xlu1 %v801_v28, %s2632_s1  ;;  %2192 = vmatprep.subr.bf16.mxu1 %v1776_v50  ;;  %v658_v39 = vpop.permute.xlu0 %657 }
 0x1df   :  { %v1764_v35 = vpop.permute.xlu1 %1763  ;;  %826 = vrot.lane.b32.xlu0 %v799_v32, %s2632_s1  ;;  %v103_v32 = vld [vmem:[%s3687_s2 + $0x38] sm:$0xff] }
 0x1e0   :  { %v1775_v23 = vsel %vm433_vm13, %v1764_v35, %v1766_v51  ;;  %vm751_vm13 = vcmask 916480  }
 0x1e1   :  { %1995 = vrot.lane.b32.xlu1 %v801_v28, %s2632_s1  ;;  %2193 = vmatpush1.bf16.msra.mxu1 %v1775_v23  ;;  %v1832_v48 = vpop.permute.xlu0 %1831  ;;  %v100_v28 = vld [vmem:[%s3687_s2 + $0x20] sm:$0xff]  ;;  %v102_v23 = vld [vmem:[%s3687_s2 + $0x30] sm:$0xff]  ;;  %s2639_s2 = smov [#allocation9]  }
 0x1e2   :  { %s2362_s0 = sshll.u32 %s2639_s2, 4  ;;  %s2363_s0 = int_to_ptr.vmem [resolvable:$true] %s2362_s0 }
 0x1e3   :  { %v660_v12 = vpop.permute.xlu1 %659  ;;  %834 = vrot.lane.b32.xlu0 %v803_v58, %s2632_s1  ;;  %s2597_s9 = scalar_lea.vmem %s2363_s0, 4096  ;;  %p2602_p3 = scmp.lt.s32.totalorder %s2363_s0, %s2363_s0 }
 0x1e4   :  { %v680_v60 = vsel %vm339_vm10, %v658_v39, %v660_v12  ;;  %p2598_p2 = scmp.ne.s32.totalorder %s2363_s0, %s2597_s9  ;;  %p2603_p4 = scmp.lt.s32.totalorder %s2597_s9, %s2597_s9 }
 0x1e5   :  { %1991 = vrot.lane.b32.xlu1 %v1964_v3, %s2632_s1  ;;  %1182 = vmatprep.subr.bf16.mxu0 %v680_v60  ;;  %v656_v7 = vpop.permute.xlu0 %655 }
 0x1e6   :  { %v679_v14 = vsel %vm339_vm10, %v656_v7, %v658_v39  ;;  %p2604_p5 = por %p2603_p4, %p2602_p3 }
 0x1e7   :  { %v1834_v49 = vpop.permute.xlu1 %1833  ;;  %1999 = vrot.lane.b32.xlu0 %v1968_v61, %s2632_s1  ;;  %1183 = vmatpush1.bf16.msra.mxu0 %v679_v14 }
 0x1e8   :  { %v1854_v56 = vsel %vm339_vm10, %v1832_v48, %v1834_v49  ;;  %p2605_p6 = pnand %p2604_p5, %p2598_p2 }
 0x1e9   :  { %836 = vrot.lane.b32.xlu1 %v804_v59, %s2632_s1  ;;  %2194 = vmatprep.subr.bf16.mxu1 %v1854_v56  ;;  %v664_v4 = vpop.permute.xlu0 %663 }
 0x1eb   :  { %v1830_v38 = vpop.permute.xlu1 %1829  ;;  %832 = vrot.lane.b32.xlu0 %v802_v41, %s2632_s1 }
 0x1ec   :  { %v1853_v53 = vsel %vm339_vm10, %v1830_v38, %v1832_v48 }
 0x1ed   :  { %2001 = vrot.lane.b32.xlu1 %v804_v59, %s2632_s1  ;;  %2195 = vmatpush1.bf16.msra.mxu1 %v1853_v53  ;;  %v1838_v2 = vpop.permute.xlu0 %1837 }
 0x1ef   :  { %v666_v46 = vpop.permute.xlu1 %665  ;;  %840 = vrot.lane.b32.xlu0 %v806_v18, %s2632_s1 }
 0x1f0   :  { %v682_v34 = vsel %vm339_vm10, %v664_v4, %v666_v46 }
 0x1f1   :  { %1997 = vrot.lane.b32.xlu1 %v1967_v13, %s2632_s1  ;;  %1184 = vmatprep.subr.bf16.mxu0 %v682_v34  ;;  %v662_v16 = vpop.permute.xlu0 %661 }
 0x1f2   :  { %v681_v26 = vsel %vm339_vm10, %v662_v16, %v664_v4 }
 0x1f3   :  { %v1840_v55 = vpop.permute.xlu1 %1839  ;;  %2005 = vrot.lane.b32.xlu0 %v1971_v15, %s2632_s1  ;;  %1185 = vmatpush1.bf16.msra.mxu0 %v681_v26 }
 0x1f4   :  { %v1856_v62 = vsel %vm339_vm10, %v1838_v2, %v1840_v55 }
 0x1f5   :  { %842 = vrot.lane.b32.xlu1 %v807_v9, %s2632_s1  ;;  %2196 = vmatprep.subr.bf16.mxu1 %v1856_v62  ;;  %v670_v36 = vpop.permute.xlu0 %669 }
 0x1f7   :  { %v1836_v22 = vpop.permute.xlu1 %1835  ;;  %838 = vrot.lane.b32.xlu0 %v805_v47, %s2632_s1 }
 0x1f8   :  { %v1855_v40 = vsel %vm339_vm10, %v1836_v22, %v1838_v2 }
 0x1f9   :  { %2007 = vrot.lane.b32.xlu1 %v807_v9, %s2632_s1  ;;  %2197 = vmatpush1.bf16.msra.mxu1 %v1855_v40  ;;  %v1844_v19 = vpop.permute.xlu0 %1843 }
 0x1fb   :  { %v672_v52 = vpop.permute.xlu1 %671  ;;  %942 = vperm.xlu0 %2514, %v96_v1  }
 0x1fc   :  { %v684_v17 = vsel %vm339_vm10, %v670_v36, %v672_v52 }
 0x1fd   :  { %2003 = vrot.lane.b32.xlu1 %v1970_v0, %s2632_s1  ;;  %1186 = vmatprep.subr.bf16.mxu0 %v684_v17  ;;  %v668_v54 = vpop.permute.xlu0 %667  ;;  %v2528_v0 = vld [vmem:[#allocation7 + $0x8] ss:$20 sps:$4 sm:$0xff]  }
 0x1fe   :  { %v683_v37 = vsel %vm339_vm10, %v668_v54, %v670_v36  ;;  %v2531_v17 = vld [vmem:[#allocation7 + $0x34] ss:$20 sps:$4 sm:$0xff]  }
 0x1ff   :  { %v1846_v8 = vpop.permute.xlu1 %1845  ;;  %1187 = vmatpush1.bf16.msra.mxu0 %v683_v37  ;;  %957 = vperm.xlu0 %2514, %v99_v57  }
 0x200   :  { %v1858_v31 = vsel %vm339_vm10, %v1844_v19, %v1846_v8 }
 0x201   :  { %2198 = vmatprep.subr.bf16.mxu1 %v1858_v31  ;;  %v676_v20 = vpop.permute.xlu0 %675  ;;  %947 = vperm.xlu1 %2515, %v97_v45   ;;  %v2536_v45 = vld [vmem:[#allocation7 + $0x58] ss:$20 sps:$4 sm:$0xff]  }
 0x203   :  { %v1842_v11 = vpop.permute.xlu1 %1841  ;;  %967 = vperm.xlu0 %2514, %v101_v21   ;;  %v2539_v21 = vld [vmem:[#allocation7 + $0x80] ss:$20 sps:$4 sm:$0xff]  }
 0x204   :  { %v1857_v29 = vsel %vm339_vm10, %v1842_v11, %v1844_v19 }
 0x205   :  { %2199 = vmatpush1.bf16.msra.mxu1 %v1857_v29  ;;  %v1850_v24 = vpop.permute.xlu0 %1849  ;;  %952 = vperm.xlu1 %2515, %v98_v42   ;;  %v2533_v29 = vld [vmem:[#allocation7 + $0x30] ss:$20 sps:$4 sm:$0xff]  }
 0x207   :  { %v678_v5 = vpop.permute.xlu1 %677  ;;  %977 = vperm.xlu0 %2514, %v103_v32  }
 0x208   :  { %v686_v44 = vsel %vm339_vm10, %v676_v20, %v678_v5  ;;  %v2534_v5 = vld [vmem:[#allocation7 + $0x5c] ss:$20 sps:$4 sm:$0xff]  }
 0x209   :  { %1188 = vmatprep.subr.bf16.mxu0 %v686_v44  ;;  %v674_v33 = vpop.permute.xlu0 %673  ;;  %962 = vperm.xlu1 %2515, %v100_v28  }
 0x20a   :  { %v685_v27 = vsel %vm339_vm10, %v674_v33, %v676_v20 }
 0x20b   :  { %v1852_v6 = vpop.permute.xlu1 %1851  ;;  %1189 = vmatpush1.bf16.msra.mxu0 %v685_v27 }
 0x20c   :  { %v1860_v30 = vsel %vm339_vm10, %v1850_v24, %v1852_v6 }
 0x20d   :  { %2200 = vmatprep.subr.bf16.mxu1 %v1860_v30  ;;  %v730_v25 = vpop.permute.xlu0 %729  ;;  %972 = vperm.xlu1 %2515, %v102_v23   ;;  %v2552_v23 = vld [vmem:[#allocation2] sm:$0xff] }
 0x20f   :  { %v1848_v51 = vpop.permute.xlu1 %1847 }
 0x210   :  { %v1859_v43 = vsel %vm339_vm10, %v1848_v51, %v1850_v24  ;;  %v2537_v51 = vld [vmem:[#allocation7 + $0x84] ss:$20 sps:$4 sm:$0xff]   ;;  %vm1080_vm10 = vcmask 523264  }
 0x211   :  { %2201 = vmatpush1.bf16.msra.mxu1 %v1859_v43  ;;  %v1904_v63 = vpop.permute.xlu0 %1903 }
 0x213   :  { %v732_v10 = vpop.permute.xlu1 %731 }
 0x214   :  { %v753_v50 = vsel %vm751_vm13, %v730_v25, %v732_v10 }
 0x215   :  { %1190 = vmatprep.subr.bf16.mxu0 %v753_v50  ;;  %v728_v39 = vpop.permute.xlu0 %727 }
 0x216   :  { %v752_v12 = vsel %vm751_vm13, %v728_v39, %v730_v25 }
 0x217   :  { %v1906_v35 = vpop.permute.xlu1 %1905  ;;  %1191 = vmatpush1.bf16.msra.mxu0 %v752_v12 }
 0x218   :  { %v1926_v48 = vsel %vm751_vm13, %v1904_v63, %v1906_v35 }
 0x219   :  { %2202 = vmatprep.subr.bf16.mxu1 %v1926_v48  ;;  %v736_v58 = vpop.permute.xlu0 %735 }
 0x21b   :  { %v1902_v3 = vpop.permute.xlu1 %1901 }
 0x21c   :  { %v1925_v60 = vsel %vm751_vm13, %v1902_v3, %v1904_v63 }
 0x21d   :  { %2203 = vmatpush1.bf16.msra.mxu1 %v1925_v60  ;;  %v1910_v7 = vpop.permute.xlu0 %1909 }
 0x21f   :  { %v738_v49 = vpop.permute.xlu1 %737 }
 0x220   :  { %v755_v14 = vsel %vm751_vm13, %v736_v58, %v738_v49 }
 0x221   :  { %1192 = vmatprep.subr.bf16.mxu0 %v755_v14  ;;  %v734_v61 = vpop.permute.xlu0 %733 }
 0x222   :  { %v754_v56 = vsel %vm751_vm13, %v734_v61, %v736_v58 }
 0x223   :  { %v1912_v59 = vpop.permute.xlu1 %1911  ;;  %1193 = vmatpush1.bf16.msra.mxu0 %v754_v56 }
 0x224   :  { %v1928_v38 = vsel %vm751_vm13, %v1910_v7, %v1912_v59 }
 0x225   :  { %2204 = vmatprep.subr.bf16.mxu1 %v1928_v38  ;;  %v742_v53 = vpop.permute.xlu0 %741 }
 0x227   :  { %v1908_v4 = vpop.permute.xlu1 %1907 }
 0x228   :  { %v1927_v41 = vsel %vm751_vm13, %v1908_v4, %v1910_v7 }
 0x229   :  { %2205 = vmatpush1.bf16.msra.mxu1 %v1927_v41  ;;  %v1916_v2 = vpop.permute.xlu0 %1915 }
 0x22b   :  { %v744_v46 = vpop.permute.xlu1 %743 }
 0x22c   :  { %v757_v13 = vsel %vm751_vm13, %v742_v53, %v744_v46 }
 0x22d   :  { %1194 = vmatprep.subr.bf16.mxu0 %v757_v13  ;;  %v740_v34 = vpop.permute.xlu0 %739 }
 0x22e   :  { %v756_v55 = vsel %vm751_vm13, %v740_v34, %v742_v53  ;;  %v2541_v34 = vld [vmem:[#allocation7 + $0x38] ss:$20 sps:$4 sm:$0xff]  }
 0x22f   :  { %v1918_v18 = vpop.permute.xlu1 %1917  ;;  %1195 = vmatpush1.bf16.msra.mxu0 %v756_v55  ;;  %v2542_v55 = vld [vmem:[#allocation7 + $0x60] ss:$20 sps:$4 sm:$0xff]  }
 0x230   :  { %v1930_v16 = vsel %vm751_vm13, %v1916_v2, %v1918_v18 }
 0x231   :  { %2206 = vmatprep.subr.bf16.mxu1 %v1930_v16  ;;  %v748_v9 = vpop.permute.xlu0 %747  ;;  %v2543_v16 = vld [vmem:[#allocation7 + $0x88] ss:$20 sps:$4 sm:$0xff]  }
 0x233   :  { %v1914_v26 = vpop.permute.xlu1 %1913 }
 0x234   :  { %v1929_v15 = vsel %vm751_vm13, %v1914_v26, %v1916_v2  ;;  %v2540_v2 = vld [vmem:[#allocation7 + $0x10] ss:$20 sps:$4 sm:$0xff]  }
 0x235   :  { %2207 = vmatpush1.bf16.msra.mxu1 %v1929_v15  ;;  %v1922_v22 = vpop.permute.xlu0 %1921 }
 0x237   :  { %v750_v62 = vpop.permute.xlu1 %749 }
 0x238   :  { %v759_v36 = vsel %vm751_vm13, %v748_v9, %v750_v62 }
 0x239   :  { %1196 = vmatprep.subr.bf16.mxu0 %v759_v36  ;;  %v746_v47 = vpop.permute.xlu0 %745 }
 0x23a   :  { %v758_v52 = vsel %vm751_vm13, %v746_v47, %v748_v9 }
 0x23b   :  { %v1924_v40 = vpop.permute.xlu1 %1923  ;;  %1197 = vmatpush1.bf16.msra.mxu0 %v758_v52 }
 0x23c   :  { %v1932_v19 = vsel %vm751_vm13, %v1922_v22, %v1924_v40 }
 0x23d   :  { %2208 = vmatprep.subr.bf16.mxu1 %v1932_v19  ;;  %v823_v54 = vpop.permute.xlu0 %822 }
 0x23e   :  { %1199 = vmatmul.mubr.bf16.vlgmr.msra.gmra.mrb[0].mxu0 %v2528_v0 }
 0x23f   :  { %v1920_v8 = vpop.permute.xlu1 %1919  ;;  %1208 = vmatprep.mubr.bf16.mxu0 %v2531_v17 }
 0x240   :  { %v1931_v37 = vsel %vm751_vm13, %v1920_v8, %v1922_v22 }
 0x241   :  { %2209 = vmatpush1.bf16.msra.mxu1 %v1931_v37  ;;  %v1988_v11 = vpop.permute.xlu0 %1987 }
 0x243   :  { %v825_v31 = vpop.permute.xlu1 %824 }
 0x244   :  { %v845_v20 = vsel %vm162_vm8, %v823_v54, %v825_v31  ;;  %2211 = vmatmul.mubr.bf16.vlgmr.msra.gmra.mrb[0].mxu1 %v2528_v0 }
 0x245   :  { %1239 = vmatprep.subr.bf16.mxu0 %v845_v20  ;;  %2220 = vmatprep.mubr.bf16.mxu1 %v2531_v17  ;;  %v821_v44 = vpop.permute.xlu0 %820 }
 0x246   :  { %v844_v6 = vsel %vm162_vm8, %v821_v44, %v823_v54  ;;  %1209 = vmatmul.mubr.bf16.gmra.mrb[4].mxu0 %v2533_v29 }
 0x247   :  { %v1990_v24 = vpop.permute.xlu1 %1989  ;;  %1240 = vmatpush1.bf16.msra.mxu0 %v844_v6  ;;  %1218 = vmatprep.mubr.bf16.mxu0 %v2534_v5 }
 0x248   :  { %v2010_v33 = vsel %vm162_vm8, %v1988_v11, %v1990_v24 }
 0x249   :  { %2251 = vmatprep.subr.bf16.mxu1 %v2010_v33  ;;  %v829_v30 = vpop.permute.xlu0 %828 }
 0x24b   :  { %v1986_v27 = vpop.permute.xlu1 %1985 }
 0x24c   :  { %v2009_v1 = vsel %vm162_vm8, %v1986_v27, %v1988_v11  ;;  %2221 = vmatmul.mubr.bf16.gmra.mrb[4].mxu1 %v2533_v29 }
 0x24d   :  { %2252 = vmatpush1.bf16.msra.mxu1 %v2009_v1  ;;  %2230 = vmatprep.mubr.bf16.mxu1 %v2534_v5  ;;  %v1994_v42 = vpop.permute.xlu0 %1993 }
 0x24e   :  { %1219 = vmatmul.mubr.bf16.gmra.mrb[8].mxu0 %v2536_v45 }
 0x24f   :  { %v831_v25 = vpop.permute.xlu1 %830  ;;  %1228 = vmatprep.mubr.bf16.mxu0 %v2537_v51 }
 0x250   :  { %v847_v57 = vsel %vm162_vm8, %v829_v30, %v831_v25 }
 0x251   :  { %1241 = vmatprep.subr.bf16.mxu0 %v847_v57  ;;  %v827_v10 = vpop.permute.xlu0 %826 }
 0x252   :  { %v846_v63 = vsel %vm162_vm8, %v827_v10, %v829_v30 }
 0x253   :  { %v1996_v43 = vpop.permute.xlu1 %1995  ;;  %1242 = vmatpush1.bf16.msra.mxu0 %v846_v63 }
 0x254   :  { %v2012_v28 = vsel %vm162_vm8, %v1994_v42, %v1996_v43  ;;  %2231 = vmatmul.mubr.bf16.gmra.mrb[8].mxu1 %v2536_v45 }
 0x255   :  { %2253 = vmatprep.subr.bf16.mxu1 %v2012_v28  ;;  %2240 = vmatprep.mubr.bf16.mxu1 %v2537_v51  ;;  %v835_v35 = vpop.permute.xlu0 %834 }
 0x256   :  { %1229 = vmatmul.mubr.bf16.gmra.mrb[12].mxu0 %v2539_v21 }
 0x257   :  { %v1992_v50 = vpop.permute.xlu1 %1991  ;;  %1271 = vmatprep.mubr.bf16.mxu0 %v2552_v23 }
 0x258   :  { %v2011_v39 = vsel %vm162_vm8, %v1992_v50, %v1994_v42 }
 0x259   :  { %2254 = vmatpush1.bf16.msra.mxu1 %v2011_v39  ;;  %v2000_v12 = vpop.permute.xlu0 %1999 }
 0x25b   :  { %v837_v32 = vpop.permute.xlu1 %836 }
 0x25c   :  { %v849_v48 = vsel %vm162_vm8, %v835_v35, %v837_v32  ;;  %2241 = vmatmul.mubr.bf16.gmra.mrb[12].mxu1 %v2539_v21 }
 0x25d   :  { %1243 = vmatprep.subr.bf16.mxu0 %v849_v48  ;;  %2283 = vmatprep.mubr.bf16.mxu1 %v2552_v23  ;;  %v833_v58 = vpop.permute.xlu0 %832 }
 0x25e   :  { %v848_v60 = vsel %vm162_vm8, %v833_v58, %v835_v35 }
 0x25f   :  { %v2002_v3 = vpop.permute.xlu1 %2001  ;;  %1244 = vmatpush1.bf16.msra.mxu0 %v848_v60 }
 0x260   :  { %v2014_v49 = vsel %vm162_vm8, %v2000_v12, %v2002_v3 }
 0x261   :  { %2255 = vmatprep.subr.bf16.mxu1 %v2014_v49  ;;  %v841_v14 = vpop.permute.xlu0 %840 }
 0x263   :  { %v1998_v7 = vpop.permute.xlu1 %1997 }
 0x264   :  { %v2013_v59 = vsel %vm162_vm8, %v1998_v7, %v2000_v12 }
 0x265   :  { %2256 = vmatpush1.bf16.msra.mxu1 %v2013_v59  ;;  %v2006_v56 = vpop.permute.xlu0 %2005 }
 0x267   :  { %v843_v61 = vpop.permute.xlu1 %842 }
 0x268   :  { %v851_v38 = vsel %vm162_vm8, %v841_v14, %v843_v61 }
 0x269   :  { %1245 = vmatprep.subr.bf16.mxu0 %v851_v38  ;;  %v839_v53 = vpop.permute.xlu0 %838 }
 0x26a   :  { %v850_v41 = vsel %vm162_vm8, %v839_v53, %v841_v14 }
 0x26b   :  { %v2008_v4 = vpop.permute.xlu1 %2007  ;;  %1246 = vmatpush1.bf16.msra.mxu0 %v850_v41 }
 0x26c   :  { %v2016_v46 = vsel %vm162_vm8, %v2006_v56, %v2008_v4 }
 0x26d   :  { %2257 = vmatprep.subr.bf16.mxu1 %v2016_v46 }
 0x26e   :  { %2395 = vmatmul.mubr.msk.bf16.vlgmr.msra.gmra.mrb[0].mxu0 %vm1080_vm10, %v2540_v2 }
 0x26f   :  { %v2004_v13 = vpop.permute.xlu1 %2003  ;;  %1281 = vmatprep.mubr.bf16.mxu0 %v2552_v23 }
 0x270   :  { %v2015_v18 = vsel %vm162_vm8, %v2004_v13, %v2006_v56 }
 0x271   :  { %2258 = vmatpush1.bf16.msra.mxu1 %v2015_v18 }
 0x274   :  { %2399 = vmatmul.mubr.msk.bf16.vlgmr.msra.gmra.mrb[0].mxu1 %vm1080_vm10, %v2540_v2 }
 0x275   :  { %2293 = vmatprep.mubr.bf16.mxu1 %v2552_v23 }
 0x276   :  { %2396 = vmatmul.mubr.msk.bf16.gmra.mrb[4].mxu0 %vm1080_vm10, %v2541_v34 }
 0x277   :  { %1291 = vmatprep.mubr.bf16.mxu0 %v2552_v23 }
 0x27a   :  { %v943_v26 = vpop.permute.xlu0 %942 }
 0x27c   :  { %2400 = vmatmul.mubr.msk.bf16.gmra.mrb[4].mxu1 %vm1080_vm10, %v2541_v34 }
 0x27d   :  { %2303 = vmatprep.mubr.bf16.mxu1 %v2552_v23 }
 0x27e   :  { %2397 = vmatmul.mubr.msk.bf16.gmra.mrb[8].mxu0 %vm1080_vm10, %v2542_v55  ;;  %v958_v1 = vpop.permute.xlu0 %957 }
 0x27f   :  { %1301 = vmatprep.mubr.bf16.mxu0 %v2552_v23 }
 0x280   :  { %v948_v15 = vpop.permute.xlu1 %947 }
 0x282   :  { %v968_v2 = vpop.permute.xlu0 %967 }
 0x284   :  { %2401 = vmatmul.mubr.msk.bf16.gmra.mrb[8].mxu1 %vm1080_vm10, %v2542_v55  ;;  %v953_v5 = vpop.permute.xlu1 %952 }
 0x285   :  { %2313 = vmatprep.mubr.bf16.mxu1 %v2552_v23 }
 0x286   :  { %2398 = vmatmul.mubr.msk.bf16.gmra.mrb[12].mxu0 %vm1080_vm10, %v2543_v16 }
 0x288   :  { %v963_v58 = vpop.permute.xlu1 %962 }
 0x28c   :  { %2402 = vmatmul.mubr.msk.bf16.gmra.mrb[12].mxu1 %vm1080_vm10, %v2543_v16 }
 0x341   :  { %v1273_v9 = vpop.f32.mrb[0].mxu0 }
 0x342   :  { %v2403_v62 = vadd.f32 %v1273_v9, %v943_v26  ;;  %v1275_v22 = vpop.f32.mrb[1].mxu0 }
 0x343   :  { %v2404_v36 = vadd.f32 %v1275_v22, %v943_v26  ;;  %v1277_v40 = vpop.f32.mrb[2].mxu0 }
 0x344   :  { %v1312_v47 = vmax.f32 %v2403_v62, 0.0  ;;  %v2405_v52 = vadd.f32 %v1277_v40, %v948_v15  ;;  %v1279_v19 = vpop.f32.mrb[3].mxu0 }
 0x345   :  { %v1313_v0 = vmax.f32 %v2404_v36, 0.0  ;;  %v2406_v17 = vadd.f32 %v1279_v19, %v948_v15 }
 0x346   :  { %1328 = vst [vmem:[#allocation9] sm:$0xff] %v1312_v47  ;;  %v1314_v54 = vmax.f32 %v2405_v52, 0.0 }
 0x347   :  { %v2285_v8 = vpop.f32.mrb[0].mxu1  ;;  %1329 = vst [vmem:[#allocation9 + $0x8] sm:$0xff] %v1313_v0  ;;  %v1315_v11 = vmax.f32 %v2406_v17, 0.0 }
 0x348   :  { %v2419_v37 = vadd.f32 %v2285_v8, %v943_v26  ;;  %v2287_v31 = vpop.f32.mrb[1].mxu1  ;;  %1330 = vst [vmem:[#allocation9 + $0x10] sm:$0xff] %v1314_v54  ;;  %v973_v8 = vpop.permute.xlu1 %972 }
 0x349   :  { %v2420_v20 = vadd.f32 %v2287_v31, %v943_v26  ;;  %v2289_v29 = vpop.f32.mrb[2].mxu1  ;;  %1331 = vst [vmem:[#allocation9 + $0x18] sm:$0xff] %v1315_v11  ;;  %v1283_v30 = vpop.f32.mrb[4].mxu0 }
 0x34a   :  { %v2324_v24 = vmax.f32 %v2419_v37, 0.0  ;;  %v2421_v44 = vadd.f32 %v2289_v29, %v948_v15  ;;  %v2291_v6 = vpop.f32.mrb[3].mxu1  ;;  %v2407_v51 = vadd.f32 %v1283_v30, %v953_v5  ;;  %v1285_v25 = vpop.f32.mrb[5].mxu0 }
 0x34b   :  { %v2325_v33 = vmax.f32 %v2420_v20, 0.0  ;;  %v2422_v27 = vadd.f32 %v2291_v6, %v948_v15  ;;  %v2408_v57 = vadd.f32 %v1285_v25, %v953_v5  ;;  %v1287_v43 = vpop.f32.mrb[6].mxu0  ;;  %v978_v29 = vpop.permute.xlu0 %977 }
 0x34c   :  { %2341 = vst [vmem:[#allocation9 + $0x80] sm:$0xff] %v2324_v24  ;;  %v2326_v45 = vmax.f32 %v2421_v44, 0.0  ;;  %v1316_v10 = vmax.f32 %v2407_v51, 0.0  ;;  %v2409_v63 = vadd.f32 %v1287_v43, %v958_v1  ;;  %v1289_v28 = vpop.f32.mrb[7].mxu0 }
 0x34d   :  { %2342 = vst [vmem:[#allocation9 + $0x88] sm:$0xff] %v2325_v33  ;;  %v2327_v42 = vmax.f32 %v2422_v27, 0.0  ;;  %v1317_v21 = vmax.f32 %v2408_v57, 0.0  ;;  %v2410_v50 = vadd.f32 %v1289_v28, %v958_v1 }
 0x34e   :  { %2343 = vst [vmem:[#allocation9 + $0x90] sm:$0xff] %v2326_v45  ;;  %1332 = vst [vmem:[#allocation9 + $0x20] sm:$0xff] %v1316_v10  ;;  %v1318_v39 = vmax.f32 %v2409_v63, 0.0 }
 0x34f   :  { %2344 = vst [vmem:[#allocation9 + $0x98] sm:$0xff] %v2327_v42  ;;  %v2295_v35 = vpop.f32.mrb[4].mxu1  ;;  %1333 = vst [vmem:[#allocation9 + $0x28] sm:$0xff] %v1317_v21  ;;  %v1319_v12 = vmax.f32 %v2410_v50, 0.0 }
 0x350   :  { %v2423_v23 = vadd.f32 %v2295_v35, %v953_v5  ;;  %v2297_v32 = vpop.f32.mrb[5].mxu1  ;;  %1334 = vst [vmem:[#allocation9 + $0x30] sm:$0xff] %v1318_v39 }
 0x351   :  { %v2424_v48 = vadd.f32 %v2297_v32, %v953_v5  ;;  %v2299_v3 = vpop.f32.mrb[6].mxu1  ;;  %1335 = vst [vmem:[#allocation9 + $0x38] sm:$0xff] %v1319_v12  ;;  %v1293_v61 = vpop.f32.mrb[8].mxu0 }
 0x352   :  { %v2328_v60 = vmax.f32 %v2423_v23, 0.0  ;;  %v2425_v49 = vadd.f32 %v2299_v3, %v958_v1  ;;  %v2301_v7 = vpop.f32.mrb[7].mxu1  ;;  %v2411_v38 = vadd.f32 %v1293_v61, %v963_v58  ;;  %v1295_v4 = vpop.f32.mrb[9].mxu0 }
 0x353   :  { %v2329_v14 = vmax.f32 %v2424_v48, 0.0  ;;  %v2426_v59 = vadd.f32 %v2301_v7, %v958_v1  ;;  %v2412_v41 = vadd.f32 %v1295_v4, %v963_v58  ;;  %v1297_v46 = vpop.f32.mrb[10].mxu0 }
 0x354   :  { %2345 = vst [vmem:[#allocation9 + $0xa0] sm:$0xff] %v2328_v60  ;;  %v2330_v56 = vmax.f32 %v2425_v49, 0.0  ;;  %v1320_v13 = vmax.f32 %v2411_v38, 0.0  ;;  %v2413_v18 = vadd.f32 %v1297_v46, %v968_v2  ;;  %v1299_v34 = vpop.f32.mrb[11].mxu0 }
 0x355   :  { %2346 = vst [vmem:[#allocation9 + $0xa8] sm:$0xff] %v2329_v14  ;;  %v2331_v53 = vmax.f32 %v2426_v59, 0.0  ;;  %v1321_v55 = vmax.f32 %v2412_v41, 0.0  ;;  %v2414_v16 = vadd.f32 %v1299_v34, %v968_v2 }
 0x356   :  { %2347 = vst [vmem:[#allocation9 + $0xb0] sm:$0xff] %v2330_v56  ;;  %1336 = vst [vmem:[#allocation9 + $0x40] sm:$0xff] %v1320_v13  ;;  %v1322_v9 = vmax.f32 %v2413_v18, 0.0 }
 0x357   :  { %2348 = vst [vmem:[#allocation9 + $0xb8] sm:$0xff] %v2331_v53  ;;  %v2305_v26 = vpop.f32.mrb[8].mxu1  ;;  %1337 = vst [vmem:[#allocation9 + $0x48] sm:$0xff] %v1321_v55  ;;  %v1323_v22 = vmax.f32 %v2414_v16, 0.0 }
 0x358   :  { %v2427_v15 = vadd.f32 %v2305_v26, %v963_v58  ;;  %v2307_v62 = vpop.f32.mrb[9].mxu1  ;;  %1338 = vst [vmem:[#allocation9 + $0x50] sm:$0xff] %v1322_v9 }
 0x359   :  { %v2428_v36 = vadd.f32 %v2307_v62, %v963_v58  ;;  %v2309_v40 = vpop.f32.mrb[10].mxu1  ;;  %1339 = vst [vmem:[#allocation9 + $0x58] sm:$0xff] %v1323_v22  ;;  %v1303_v54 = vpop.f32.mrb[12].mxu0 }
 0x35a   :  { %v2332_v47 = vmax.f32 %v2427_v15, 0.0  ;;  %v2429_v52 = vadd.f32 %v2309_v40, %v968_v2  ;;  %v2311_v19 = vpop.f32.mrb[11].mxu1  ;;  %v2415_v31 = vadd.f32 %v1303_v54, %v973_v8  ;;  %v1305_v11 = vpop.f32.mrb[13].mxu0 }
 0x35b   :  { %v2333_v0 = vmax.f32 %v2428_v36, 0.0  ;;  %v2430_v17 = vadd.f32 %v2311_v19, %v968_v2  ;;  %v2416_v5 = vadd.f32 %v1305_v11, %v973_v8  ;;  %v1307_v24 = vpop.f32.mrb[14].mxu0 }
 0x35c   :  { %2349 = vst [vmem:[#allocation9 + $0xc0] sm:$0xff] %v2332_v47  ;;  %v2334_v37 = vmax.f32 %v2429_v52, 0.0  ;;  %v1324_v44 = vmax.f32 %v2415_v31, 0.0  ;;  %v2417_v6 = vadd.f32 %v1307_v24, %v978_v29  ;;  %v1309_v33 = vpop.f32.mrb[15].mxu0 }
 0x35d   :  { %2350 = vst [vmem:[#allocation9 + $0xc8] sm:$0xff] %v2333_v0  ;;  %v2335_v20 = vmax.f32 %v2430_v17, 0.0  ;;  %v1325_v27 = vmax.f32 %v2416_v5, 0.0  ;;  %v2418_v30 = vadd.f32 %v1309_v33, %v978_v29 }
 0x35e   :  { %2351 = vst [vmem:[#allocation9 + $0xd0] sm:$0xff] %v2334_v37  ;;  %1340 = vst [vmem:[#allocation9 + $0x60] sm:$0xff] %v1324_v44  ;;  %v1326_v45 = vmax.f32 %v2417_v6, 0.0 }
 0x35f   :  { %2352 = vst [vmem:[#allocation9 + $0xd8] sm:$0xff] %v2335_v20  ;;  %v2315_v1 = vpop.f32.mrb[12].mxu1  ;;  %1341 = vst [vmem:[#allocation9 + $0x68] sm:$0xff] %v1325_v27  ;;  %v1327_v42 = vmax.f32 %v2418_v30, 0.0 }
 0x360   :  { %v2431_v51 = vadd.f32 %v2315_v1, %v973_v8  ;;  %v2317_v25 = vpop.f32.mrb[13].mxu1  ;;  %1342 = vst [vmem:[#allocation9 + $0x70] sm:$0xff] %v1326_v45 }
 0x361   :  { %v2432_v57 = vadd.f32 %v2317_v25, %v973_v8  ;;  %v2319_v43 = vpop.f32.mrb[14].mxu1  ;;  %1343 = vst [vmem:[#allocation9 + $0x78] sm:$0xff] %v1327_v42 }
 0x362   :  { %v2336_v10 = vmax.f32 %v2431_v51, 0.0  ;;  %v2433_v63 = vadd.f32 %v2319_v43, %v978_v29  ;;  %v2321_v28 = vpop.f32.mrb[15].mxu1 }
 0x363   :  { %v2337_v21 = vmax.f32 %v2432_v57, 0.0  ;;  %v2434_v50 = vadd.f32 %v2321_v28, %v978_v29 }
 0x364   :  { %2353 = vst [vmem:[#allocation9 + $0xe0] sm:$0xff] %v2336_v10  ;;  %v2338_v35 = vmax.f32 %v2433_v63, 0.0 }
 0x365   :  { %2354 = vst [vmem:[#allocation9 + $0xe8] sm:$0xff] %v2337_v21  ;;  %v2339_v39 = vmax.f32 %v2434_v50, 0.0 }
 0x366   :  { %2355 = vst [vmem:[#allocation9 + $0xf0] sm:$0xff] %v2338_v35 }
 0x367   :  { %2356 = vst [vmem:[#allocation9 + $0xf8] sm:$0xff] %v2339_v39 }
 0x368   :  { %2608 = shalt.err (!%p2605_p6)
}
 0x369   :  { %s2609_s1 = scalar_lea.hbm %s3688_s3, 4096 }
 0x36a   :  { %p2610_p7 = scmp.ne.s32.totalorder %s3688_s3, %s2609_s1  ;;  %p2613_p8 = scmp.lt.u32.totalorder %s2609_s1, %s3688_s3 }
 0x36c   :  { %p2615_p9 = pnand %p2613_p8, %p2610_p7 }
 0x36e   :  { %2618 = shalt.err (!%p2615_p9)
}
 0x36f   :  { %2368 = dma.vmem_to_hbm [thread:$0]  %s2363_s0, 4096, %s3688_s3, [#allocation6], %s2626_s22, %s2626_s22, %s2627_s23  }
 0x370   :  { %2623 = dma.done.wait [#allocation6], 4096  }
 0x371   :  { %2624 = vsyncadd [#allocation6], 4294963200 }
 0x372   :  { %2372 = vsyncpa [#allocation5], 1 }
 0x373   :  { %2373 = vsyncpa [#allocation8], 1 }
 0x374   :  { %2374 = vsyncpa [#allocation6], 1 }

</bundles_post_ra>
